<compile_context>
chip_gen: v7x
topology: tpu7x:2x2x1
jax: 0.10.0
libtpu: 0.0.40
codegen_flags: <defaults>
</compile_context>

<pallas_src>
import functools
import math

import jax
import jax.numpy as jnp
from jax.experimental import pallas as pl
from jax.experimental.pallas import tpu as pltpu

D = 32          # input dimension d
H = 4           # number of heads h
K = 4           # number of seed vectors k
P = D // H      # per-head dimension
EPS = 1e-5      # nn.LayerNorm default eps

# rows of the packed bias / LayerNorm / head-mask slab
_B1S, _B3, _B2S, _BVKQ, _G1, _BE1, _B4, _G2, _BE2, _HM0 = range(10)


def _layer_norm(x, gamma, beta):
    mu = jnp.mean(x, axis=-1, keepdims=True)
    var = jnp.mean(jnp.square(x - mu), axis=-1, keepdims=True)
    return (x - mu) * jax.lax.rsqrt(var + EPS) * gamma + beta


def pma_kernel(z_ref, w1s_ref, w2s_ref, wvkq_ref, wo_ref, w3_ref, w4_ref,
               sres_ref, vec_ref, ssm_ref, out_ref, *, n_set, k_seed, n_heads):
    f32 = jnp.float32
    tbn, d = z_ref.shape                 # tbn = TB * N
    tb = tbn // n_set
    hk = n_heads * k_seed
    ktb = k_seed * tb

    vec = vec_ref[...]                   # packed bias / LayerNorm / head-mask slab
    b1s = vec[_B1S:_B1S + 1, :4 * d]
    b3 = vec[_B3:_B3 + 1, :4 * d]
    b2s = vec[_B2S:_B2S + 1, :d]
    bvkq = vec[_BVKQ:_BVKQ + 1, :d + hk]
    g1 = vec[_G1:_G1 + 1, :d]
    be1 = vec[_BE1:_BE1 + 1, :d]
    b4 = vec[_B4:_B4 + 1, :d]
    g2 = vec[_G2:_G2 + 1, :d]
    be2 = vec[_BE2:_BE2 + 1, :d]
    hmask = vec[_HM0:_HM0 + n_heads, :d]           # (H, d) 0/1 head lane masks (hoisted)

    # ---- rff_s(z): Linear(d,4d) -> ReLU -> Linear(4d,d) -> ReLU, on all TB*N rows ----
    z = z_ref[...].astype(f32)                                              # (tbn, d)
    h1 = jnp.maximum(jnp.dot(z, w1s_ref[...], preferred_element_type=f32) + b1s, 0.0)
    y = jnp.maximum(jnp.dot(h1, w2s_ref[...], preferred_element_type=f32) + b2s, 0.0)

    # ---- fused V | (K-proj folded with Q, pre-scaled) projection: one matmul gives both
    #      the value rows and the per-head attention logits (no separate logits matmul).
    vkq = jnp.dot(y, wvkq_ref[...], preferred_element_type=f32) + bvkq      # (tbn, d+hk)
    vmat = vkq[:, :d]
    logits = vkq[:, d:d + hk]                                               # already /sqrt(P)

    # ---- softmax over the N keys of each sample ----
    lt3 = logits.reshape(tb, n_set, hk)
    lmax = jnp.max(lt3, axis=1, keepdims=True)
    lexp = jnp.exp(lt3 - lmax)
    inv = 1.0 / jnp.sum(lexp, axis=1, keepdims=True)        # reciprocal on (tb,1,hk) only
    probs = (lexp * inv).reshape(tbn, hk)
    p_t = probs.T                                                           # (hk, tbn)

    # ---- softmax(QK^T) V: H accumulated (ktb, tbn) x (tbn, d) matmuls.  The hoisted
    #      same-sample mask restricts every seed row to its own sample's keys; the hoisted
    #      head mask keeps only head-h output lanes. ----
    ssm = ssm_ref[...]                                                      # (ktb, tbn)
    att = None
    for h in range(n_heads):
        blk = p_t[h * k_seed:(h + 1) * k_seed]                              # (k, tbn)
        lhs_h = jnp.broadcast_to(blk[:, None, :],
                                 (k_seed, tb, tbn)).reshape(ktb, tbn) * ssm
        rhs_h = vmat * hmask[h:h + 1, :]                                    # (tbn, d)
        contrib = jnp.dot(lhs_h, rhs_h, preferred_element_type=f32)         # (ktb, d)
        att = contrib if att is None else att + contrib

    # ---- h = LayerNorm1(seed + multihead(seed, y, y)) ----
    # sres_ref already holds seed[kk] + bo, tiled over the TB samples of this block.
    mha = jnp.dot(att, wo_ref[...], preferred_element_type=f32) + sres_ref[...]
    hmid = _layer_norm(mha, g1, be1)                                        # (ktb, d)

    # ---- rff(h): Linear(d,4d) -> ReLU -> Linear(4d,d) -> ReLU, then LayerNorm2 ----
    r1 = jnp.maximum(jnp.dot(hmid, w3_ref[...], preferred_element_type=f32) + b3, 0.0)
    r2 = jnp.maximum(jnp.dot(r1, w4_ref[...], preferred_element_type=f32) + b4, 0.0)
    out = _layer_norm(hmid + r2, g2, be2)                                   # (ktb, d), row = kk*tb + b

    # ---- lane-dense (tb, k*d) output block: 128-lane unmasked stores ----
    out_ref[...] = jnp.concatenate(
        [out[kk * tb:(kk + 1) * tb, :] for kk in range(k_seed)], axis=1
    ).astype(out_ref.dtype)


def _pick_tb(b, requested=None):
    """Batch tile: multiple of 8, prefer >= 2 grid blocks (v7x megacore), capped at 64."""
    if requested is None:
        tb = 8 if b <= 16 else min(64, max(8, (b // 2) // 8 * 8))
    else:
        tb = int(requested)
    tb = max(8, (tb // 8) * 8)
    return min(tb, max(8, ((b + 7) // 8) * 8))


def pooling_multihead_attention(z, params, *, tb=None, num_heads=H):
    """Forward pass of PoolingMultiheadAttention as one Pallas TPU kernel call."""
    (seed, w1s, b1s, w2s, b2s, wq, bq, wk, bk, wv, bv, wo, bo,
     g1, be1, w3, b3, w4, b4, g2, be2) = params
    b, n, d = z.shape
    k_seed = seed.shape[0]
    assert d % num_heads == 0
    p_head = d // num_heads
    hk = num_heads * k_seed
    f32 = jnp.float32

    tb = _pick_tb(b, tb)
    blocks = -(-b // tb)
    b_pad = blocks * tb

    zf = z if z.dtype == f32 else z.astype(f32)
    if b_pad != b:
        zf = jnp.pad(zf, ((0, b_pad - b), (0, 0), (0, 0)))   # tail-only pad
    z_flat = zf.reshape(b_pad * n, d)

    # ---- batch-invariant precomputation (hoisted out of the kernel) ----
    # q_bd_t[j, c] = q[c % k, j] if dim j belongs to head c // k else 0 (block-diag over heads)
    q = seed.astype(f32) @ wq.astype(f32) + bq.astype(f32)        # (k, d)
    head_of_col = jnp.arange(hk) // k_seed
    head_of_dim = jnp.arange(d) // p_head
    q_bd_t = jnp.where(head_of_dim[:, None] == head_of_col[None, :],
                       jnp.tile(q, (num_heads, 1)).T, 0.0)        # (d, hk)

    scale = 1.0 / math.sqrt(p_head)
    wkq = (wk.astype(f32) @ q_bd_t) * scale                       # (d, hk): K proj folded with Q
    bkq = (bk.astype(f32) @ q_bd_t) * scale                       # (1, hk)
    wvkq = jnp.concatenate([wv.astype(f32), wkq], axis=1)         # (d, d+hk)
    bvkq = jnp.concatenate([bv.astype(f32), bkq], axis=1)         # (1, d+hk)

    sres = (jnp.repeat(seed, tb, axis=0) + bo).astype(f32)        # (k*tb, d): seed[kk] + bo

    # hoisted batch-invariant masks
    rows = jnp.arange(k_seed * tb)
    cols = jnp.arange(tb * n)
    ssmask = ((rows[:, None] % tb) == (cols[None, :] // n)).astype(f32)   # (k*tb, tb*n)
    hmask = (jnp.arange(num_heads)[:, None] == head_of_dim[None, :]).astype(f32)  # (H, d)

    # ---- pack every bias / LayerNorm vector / head mask into one small slab ----
    slab_w = max(4 * d, d + hk)

    def _row(v):
        v = jnp.asarray(v, f32).reshape(1, -1)
        return jnp.pad(v, ((0, 0), (0, slab_w - v.shape[1])))

    rows_slab = ([b1s, b3, b2s, bvkq, g1, be1, b4, g2, be2]
                 + [hmask[h] for h in range(num_heads)])
    n_rows = len(rows_slab)
    slab_h = ((n_rows + 7) // 8) * 8
    vec_slab = jnp.concatenate([_row(v) for v in rows_slab]
                               + [jnp.zeros((slab_h - n_rows, slab_w), f32)], axis=0)

    def _full(a):
        return pl.BlockSpec(a.shape, lambda i: (0, 0))

    # advisory cost estimate for XLA scheduling around this ~microsecond kernel
    flops = 2 * b_pad * (
        n * d * 4 * d            # rff_s layer 1
        + n * 4 * d * d          # rff_s layer 2
        + n * d * (d + hk)       # fused V | K.q projection
        + k_seed * n * d         # attention-weighted sum
        + k_seed * d * d         # output projection
        + k_seed * d * 4 * d     # rFF layer 1
        + k_seed * 4 * d * d     # rFF layer 2
    )
    bytes_accessed = 4 * (z_flat.size + b_pad * k_seed * d
                          + w1s.size + w2s.size + wvkq.size + wo.size + w3.size + w4.size
                          + sres.size + vec_slab.size + ssmask.size)
    cost = pl.CostEstimate(flops=int(flops), transcendentals=int(b_pad * n * hk),
                           bytes_accessed=int(bytes_accessed))

    kernel = functools.partial(pma_kernel, n_set=n, k_seed=k_seed, n_heads=num_heads)
    out = pl.pallas_call(
        kernel,
        out_shape=jax.ShapeDtypeStruct((b_pad, k_seed * d), f32),
        grid_spec=pltpu.PrefetchScalarGridSpec(
            num_scalar_prefetch=0,
            grid=(blocks,),
            in_specs=[
                pl.BlockSpec((tb * n, d), lambda i: (i, 0)),
                _full(w1s), _full(w2s), _full(wvkq), _full(wo),
                _full(w3), _full(w4), _full(sres), _full(vec_slab), _full(ssmask),
            ],
            out_specs=pl.BlockSpec((tb, k_seed * d), lambda i: (i, 0)),
        ),
        compiler_params=pltpu.CompilerParams(dimension_semantics=("parallel",)),
        cost_estimate=cost,
    )(z_flat, w1s.astype(f32), w2s.astype(f32), wvkq, wo.astype(f32),
      w3.astype(f32), w4.astype(f32), sres, vec_slab, ssmask)

    return out.reshape(b_pad, k_seed, d)[:b]


def init_params(key, d=D, k=K):
    """Deterministic synthetic parameters mimicking PyTorch default inits."""
    keys = jax.random.split(key, 16)

    def lin(kk, fan_in, fan_out):
        # nn.Linear default: U(-1/sqrt(fan_in), 1/sqrt(fan_in)), weight stored (in, out).
        bound = 1.0 / math.sqrt(fan_in)
        kw, kb = jax.random.split(kk)
        w = jax.random.uniform(kw, (fan_in, fan_out), jnp.float32, -bound, bound)
        bvec = jax.random.uniform(kb, (1, fan_out), jnp.float32, -bound, bound)
        return w, bvec

    seed_vectors = jax.random.normal(keys[0], (k, d), jnp.float32)   # torch.randn(1, k, d)
    w1s, b1s = lin(keys[1], d, 4 * d)     # rff_s layer 1
    w2s, b2s = lin(keys[2], 4 * d, d)     # rff_s layer 2
    wq, bq = lin(keys[3], d, d)           # project_q
    wk, bk = lin(keys[4], d, d)           # project_k
    wv, bv = lin(keys[5], d, d)           # project_v
    wo, bo = lin(keys[6], d, d)           # output / concatenation projection
    g1 = jnp.ones((1, d), jnp.float32); be1 = jnp.zeros((1, d), jnp.float32)
    w3, b3 = lin(keys[7], d, 4 * d)       # rff (inside MAB) layer 1
    w4, b4 = lin(keys[8], 4 * d, d)       # rff (inside MAB) layer 2
    g2 = jnp.ones((1, d), jnp.float32); be2 = jnp.zeros((1, d), jnp.float32)
    return (seed_vectors, w1s, b1s, w2s, b2s, wq, bq, wk, bk, wv, bv, wo, bo,
            g1, be1, w3, b3, w4, b4, g2, be2)


def reference(z, params):
    """Pure-JAX reference of the PyTorch forward for verification."""
    (seed, w1s, b1s, w2s, b2s, wq, bq, wk, bk, wv, bv, wo, bo,
     g1, be1, w3, b3, w4, b4, g2, be2) = params
    b = z.shape[0]
    s = jnp.broadcast_to(seed[None], (b,) + seed.shape)
    y = jnp.maximum(jnp.maximum(z @ w1s + b1s, 0.0) @ w2s + b2s, 0.0)
    q, k, v = s @ wq + bq, y @ wk + bk, y @ wv + bv

    def split_heads(x):
        bb, nn, _ = x.shape
        return x.reshape(bb, nn, H, P).transpose(0, 2, 1, 3)

    qh, kh, vh = split_heads(q), split_heads(k), split_heads(v)
    logits = jnp.einsum('bhkp,bhnp->bhkn', qh, kh) / math.sqrt(P)
    probs = jax.nn.softmax(logits, axis=-1)
    att = jnp.einsum('bhkn,bhnp->bhkp', probs, vh)
    att = att.transpose(0, 2, 1, 3).reshape(b, seed.shape[0], seed.shape[1])
    mha = att @ wo + bo

    def ln(x, g, bta):
        mu = x.mean(-1, keepdims=True)
        var = ((x - mu) ** 2).mean(-1, keepdims=True)
        return (x - mu) / jnp.sqrt(var + EPS) * g + bta

    h = ln(s + mha, g1, be1)
    r = jnp.maximum(jnp.maximum(h @ w3 + b3, 0.0) @ w4 + b4, 0.0)
    return ln(h + r, g2, be2)


if __name__ == "__main__":
    key = jax.random.PRNGKey(0)
    kz, kp = jax.random.split(key)
    B, N = 32, 8
    z = jax.random.normal(kz, (B, N, D), jnp.float32)
    params = init_params(kp)

    out = pooling_multihead_attention(z, params)
    out = jax.block_until_ready(out)

    ref = reference(z, params)
    assert out.shape == (B, K, D), out.shape
    assert jnp.allclose(out, ref, atol=1e-4, rtol=1e-4), \
        f"max abs err {jnp.max(jnp.abs(out - ref))}"
    print("KERNEL_OK")
</pallas_src>

<mosaic_0001>
module attributes {stable_mosaic.version = 11 : i64} {
  func.func @pma_kernel(%arg0: i32, %arg1: memref<128x32xf32, #tpu.memory_space<vmem>>, %arg2: memref<32x128xf32, #tpu.memory_space<vmem>>, %arg3: memref<128x32xf32, #tpu.memory_space<vmem>>, %arg4: memref<32x48xf32, #tpu.memory_space<vmem>>, %arg5: memref<32x32xf32, #tpu.memory_space<vmem>>, %arg6: memref<32x128xf32, #tpu.memory_space<vmem>>, %arg7: memref<128x32xf32, #tpu.memory_space<vmem>>, %arg8: memref<64x32xf32, #tpu.memory_space<vmem>>, %arg9: memref<16x128xf32, #tpu.memory_space<vmem>>, %arg10: memref<64x128xf32, #tpu.memory_space<vmem>>, %arg11: memref<16x128xf32, #tpu.memory_space<vmem>>) attributes {dimension_semantics = [#tpu.dimension_semantics<parallel>], iteration_bounds = array<i64: 2>, scalar_prefetch = 0 : i64, scratch_operands = 0 : i64, tpu.core_type = #tpu.core_type<tc>, window_params = [{transform_indices = @transform_0, window_bounds = array<i64: 128, 32>}, {pipeline_mode = #tpu.pipeline_mode<synchronous>, transform_indices = @transform_1, window_bounds = array<i64: 32, 128>}, {pipeline_mode = #tpu.pipeline_mode<synchronous>, transform_indices = @transform_2, window_bounds = array<i64: 128, 32>}, {pipeline_mode = #tpu.pipeline_mode<synchronous>, transform_indices = @transform_3, window_bounds = array<i64: 32, 48>}, {pipeline_mode = #tpu.pipeline_mode<synchronous>, transform_indices = @transform_4, window_bounds = array<i64: 32, 32>}, {pipeline_mode = #tpu.pipeline_mode<synchronous>, transform_indices = @transform_5, window_bounds = array<i64: 32, 128>}, {pipeline_mode = #tpu.pipeline_mode<synchronous>, transform_indices = @transform_6, window_bounds = array<i64: 128, 32>}, {pipeline_mode = #tpu.pipeline_mode<synchronous>, transform_indices = @transform_7, window_bounds = array<i64: 64, 32>}, {pipeline_mode = #tpu.pipeline_mode<synchronous>, transform_indices = @transform_8, window_bounds = array<i64: 16, 128>}, {pipeline_mode = #tpu.pipeline_mode<synchronous>, transform_indices = @transform_9, window_bounds = array<i64: 64, 128>}, {transform_indices = @transform_10, window_bounds = array<i64: 16, 128>}]} {
    %c0 = arith.constant 0 : index
    %c0_0 = arith.constant 0 : index
    %0 = vector.load %arg9[%c0, %c0_0] : memref<16x128xf32, #tpu.memory_space<vmem>>, vector<16x128xf32>
    %1 = vector.extract_strided_slice %0 {offsets = [0, 0], sizes = [1, 128], strides = [1, 1]} : vector<16x128xf32> to vector<1x128xf32>
    %2 = vector.extract_strided_slice %0 {offsets = [1, 0], sizes = [1, 128], strides = [1, 1]} : vector<16x128xf32> to vector<1x128xf32>
    %3 = vector.extract_strided_slice %0 {offsets = [2, 0], sizes = [1, 32], strides = [1, 1]} : vector<16x128xf32> to vector<1x32xf32>
    %4 = vector.extract_strided_slice %0 {offsets = [3, 0], sizes = [1, 48], strides = [1, 1]} : vector<16x128xf32> to vector<1x48xf32>
    %5 = vector.extract_strided_slice %0 {offsets = [4, 0], sizes = [1, 32], strides = [1, 1]} : vector<16x128xf32> to vector<1x32xf32>
    %6 = vector.extract_strided_slice %0 {offsets = [5, 0], sizes = [1, 32], strides = [1, 1]} : vector<16x128xf32> to vector<1x32xf32>
    %7 = vector.extract_strided_slice %0 {offsets = [6, 0], sizes = [1, 32], strides = [1, 1]} : vector<16x128xf32> to vector<1x32xf32>
    %8 = vector.extract_strided_slice %0 {offsets = [7, 0], sizes = [1, 32], strides = [1, 1]} : vector<16x128xf32> to vector<1x32xf32>
    %9 = vector.extract_strided_slice %0 {offsets = [8, 0], sizes = [1, 32], strides = [1, 1]} : vector<16x128xf32> to vector<1x32xf32>
    %10 = vector.extract_strided_slice %0 {offsets = [9, 0], sizes = [4, 32], strides = [1, 1]} : vector<16x128xf32> to vector<4x32xf32>
    %c0_1 = arith.constant 0 : index
    %c0_2 = arith.constant 0 : index
    %11 = vector.load %arg1[%c0_1, %c0_2] : memref<128x32xf32, #tpu.memory_space<vmem>>, vector<128x32xf32>
    %c0_3 = arith.constant 0 : index
    %c0_4 = arith.constant 0 : index
    %12 = vector.load %arg2[%c0_3, %c0_4] : memref<32x128xf32, #tpu.memory_space<vmem>>, vector<32x128xf32>
    %cst = arith.constant dense<0.000000e+00> : vector<128x128xf32>
    %13 = tpu.matmul %11, %12, %cst {dimension_numbers = #tpu.dot_dimension_numbers<[1], [0], [0], [1], [0, 0, 1, 1], [], []>} : vector<128x32xf32>, vector<32x128xf32>, vector<128x128xf32> -> vector<128x128xf32>
    %14 = vector.broadcast %1 : vector<1x128xf32> to vector<128x128xf32>
    %15 = arith.addf %13, %14 : vector<128x128xf32>
    %cst_5 = arith.constant 0.000000e+00 : f32
    %16 = vector.broadcast %cst_5 : f32 to vector<128x128xf32>
    %17 = arith.maximumf %15, %16 : vector<128x128xf32>
    %c0_6 = arith.constant 0 : index
    %c0_7 = arith.constant 0 : index
    %18 = vector.load %arg3[%c0_6, %c0_7] : memref<128x32xf32, #tpu.memory_space<vmem>>, vector<128x32xf32>
    %cst_8 = arith.constant dense<0.000000e+00> : vector<128x32xf32>
    %19 = tpu.matmul %17, %18, %cst_8 {dimension_numbers = #tpu.dot_dimension_numbers<[1], [0], [0], [1], [0, 0, 1, 1], [], []>} : vector<128x128xf32>, vector<128x32xf32>, vector<128x32xf32> -> vector<128x32xf32>
    %20 = vector.broadcast %3 : vector<1x32xf32> to vector<128x32xf32>
    %21 = arith.addf %19, %20 : vector<128x32xf32>
    %cst_9 = arith.constant 0.000000e+00 : f32
    %22 = vector.broadcast %cst_9 : f32 to vector<128x32xf32>
    %23 = arith.maximumf %21, %22 : vector<128x32xf32>
    %c0_10 = arith.constant 0 : index
    %c0_11 = arith.constant 0 : index
    %24 = vector.load %arg4[%c0_10, %c0_11] : memref<32x48xf32, #tpu.memory_space<vmem>>, vector<32x48xf32>
    %cst_12 = arith.constant dense<0.000000e+00> : vector<128x48xf32>
    %25 = tpu.matmul %23, %24, %cst_12 {dimension_numbers = #tpu.dot_dimension_numbers<[1], [0], [0], [1], [0, 0, 1, 1], [], []>} : vector<128x32xf32>, vector<32x48xf32>, vector<128x48xf32> -> vector<128x48xf32>
    %26 = vector.broadcast %4 : vector<1x48xf32> to vector<128x48xf32>
    %27 = arith.addf %25, %26 : vector<128x48xf32>
    %28 = vector.extract_strided_slice %27 {offsets = [0, 0], sizes = [128, 32], strides = [1, 1]} : vector<128x48xf32> to vector<128x32xf32>
    %29 = vector.extract_strided_slice %27 {offsets = [0, 32], sizes = [128, 16], strides = [1, 1]} : vector<128x48xf32> to vector<128x16xf32>
    %30 = vector.shape_cast %29 : vector<128x16xf32> to vector<16x8x16xf32>
    %cst_13 = arith.constant dense<0xFF800000> : vector<16x16xf32>
    %31 = vector.multi_reduction <maximumf>, %30, %cst_13 [1] : vector<16x8x16xf32> to vector<16x16xf32>
    %32 = vector.shape_cast %31 : vector<16x16xf32> to vector<16x1x16xf32>
    %33 = vector.broadcast %32 : vector<16x1x16xf32> to vector<16x8x16xf32>
    %34 = arith.subf %30, %33 : vector<16x8x16xf32>
    %35 = math.exp %34 : vector<16x8x16xf32>
    %cst_14 = arith.constant dense<0.000000e+00> : vector<16x16xf32>
    %36 = vector.multi_reduction <add>, %35, %cst_14 [1] : vector<16x8x16xf32> to vector<16x16xf32>
    %37 = vector.shape_cast %36 : vector<16x16xf32> to vector<16x1x16xf32>
    %cst_15 = arith.constant 1.000000e+00 : f32
    %38 = vector.broadcast %cst_15 : f32 to vector<16x1x16xf32>
    %39 = arith.divf %38, %37 : vector<16x1x16xf32>
    %40 = vector.broadcast %39 : vector<16x1x16xf32> to vector<16x8x16xf32>
    %41 = arith.mulf %35, %40 : vector<16x8x16xf32>
    %42 = vector.shape_cast %41 : vector<16x8x16xf32> to vector<128x16xf32>
    %43 = tpu.transpose %42, [1, 0] : vector<128x16xf32> -> vector<16x128xf32>
    %c0_16 = arith.constant 0 : index
    %c0_17 = arith.constant 0 : index
    %44 = vector.load %arg10[%c0_16, %c0_17] : memref<64x128xf32, #tpu.memory_space<vmem>>, vector<64x128xf32>
    %45 = vector.extract_strided_slice %43 {offsets = [0, 0], sizes = [4, 128], strides = [1, 1]} : vector<16x128xf32> to vector<4x128xf32>
    %46 = vector.shape_cast %45 : vector<4x128xf32> to vector<4x1x128xf32>
    %47 = vector.shape_cast %46 : vector<4x1x128xf32> to vector<4x1x128xf32>
    %48 = vector.broadcast %47 : vector<4x1x128xf32> to vector<4x16x128xf32>
    %49 = vector.shape_cast %48 : vector<4x16x128xf32> to vector<64x128xf32>
    %50 = arith.mulf %49, %44 : vector<64x128xf32>
    %51 = vector.extract_strided_slice %10 {offsets = [0, 0], sizes = [1, 32], strides = [1, 1]} : vector<4x32xf32> to vector<1x32xf32>
    %52 = vector.broadcast %51 : vector<1x32xf32> to vector<128x32xf32>
    %53 = arith.mulf %28, %52 : vector<128x32xf32>
    %cst_18 = arith.constant dense<0.000000e+00> : vector<64x32xf32>
    %54 = tpu.matmul %50, %53, %cst_18 {dimension_numbers = #tpu.dot_dimension_numbers<[1], [0], [0], [1], [0, 0, 1, 1], [], []>} : vector<64x128xf32>, vector<128x32xf32>, vector<64x32xf32> -> vector<64x32xf32>
    %55 = vector.extract_strided_slice %43 {offsets = [4, 0], sizes = [4, 128], strides = [1, 1]} : vector<16x128xf32> to vector<4x128xf32>
    %56 = vector.shape_cast %55 : vector<4x128xf32> to vector<4x1x128xf32>
    %57 = vector.shape_cast %56 : vector<4x1x128xf32> to vector<4x1x128xf32>
    %58 = vector.broadcast %57 : vector<4x1x128xf32> to vector<4x16x128xf32>
    %59 = vector.shape_cast %58 : vector<4x16x128xf32> to vector<64x128xf32>
    %60 = arith.mulf %59, %44 : vector<64x128xf32>
    %61 = vector.extract_strided_slice %10 {offsets = [1, 0], sizes = [1, 32], strides = [1, 1]} : vector<4x32xf32> to vector<1x32xf32>
    %62 = vector.broadcast %61 : vector<1x32xf32> to vector<128x32xf32>
    %63 = arith.mulf %28, %62 : vector<128x32xf32>
    %cst_19 = arith.constant dense<0.000000e+00> : vector<64x32xf32>
    %64 = tpu.matmul %60, %63, %cst_19 {dimension_numbers = #tpu.dot_dimension_numbers<[1], [0], [0], [1], [0, 0, 1, 1], [], []>} : vector<64x128xf32>, vector<128x32xf32>, vector<64x32xf32> -> vector<64x32xf32>
    %65 = arith.addf %54, %64 : vector<64x32xf32>
    %66 = vector.extract_strided_slice %43 {offsets = [8, 0], sizes = [4, 128], strides = [1, 1]} : vector<16x128xf32> to vector<4x128xf32>
    %67 = vector.shape_cast %66 : vector<4x128xf32> to vector<4x1x128xf32>
    %68 = vector.shape_cast %67 : vector<4x1x128xf32> to vector<4x1x128xf32>
    %69 = vector.broadcast %68 : vector<4x1x128xf32> to vector<4x16x128xf32>
    %70 = vector.shape_cast %69 : vector<4x16x128xf32> to vector<64x128xf32>
    %71 = arith.mulf %70, %44 : vector<64x128xf32>
    %72 = vector.extract_strided_slice %10 {offsets = [2, 0], sizes = [1, 32], strides = [1, 1]} : vector<4x32xf32> to vector<1x32xf32>
    %73 = vector.broadcast %72 : vector<1x32xf32> to vector<128x32xf32>
    %74 = arith.mulf %28, %73 : vector<128x32xf32>
    %cst_20 = arith.constant dense<0.000000e+00> : vector<64x32xf32>
    %75 = tpu.matmul %71, %74, %cst_20 {dimension_numbers = #tpu.dot_dimension_numbers<[1], [0], [0], [1], [0, 0, 1, 1], [], []>} : vector<64x128xf32>, vector<128x32xf32>, vector<64x32xf32> -> vector<64x32xf32>
    %76 = arith.addf %65, %75 : vector<64x32xf32>
    %77 = vector.extract_strided_slice %43 {offsets = [12, 0], sizes = [4, 128], strides = [1, 1]} : vector<16x128xf32> to vector<4x128xf32>
    %78 = vector.shape_cast %77 : vector<4x128xf32> to vector<4x1x128xf32>
    %79 = vector.shape_cast %78 : vector<4x1x128xf32> to vector<4x1x128xf32>
    %80 = vector.broadcast %79 : vector<4x1x128xf32> to vector<4x16x128xf32>
    %81 = vector.shape_cast %80 : vector<4x16x128xf32> to vector<64x128xf32>
    %82 = arith.mulf %81, %44 : vector<64x128xf32>
    %83 = vector.extract_strided_slice %10 {offsets = [3, 0], sizes = [1, 32], strides = [1, 1]} : vector<4x32xf32> to vector<1x32xf32>
    %84 = vector.broadcast %83 : vector<1x32xf32> to vector<128x32xf32>
    %85 = arith.mulf %28, %84 : vector<128x32xf32>
    %cst_21 = arith.constant dense<0.000000e+00> : vector<64x32xf32>
    %86 = tpu.matmul %82, %85, %cst_21 {dimension_numbers = #tpu.dot_dimension_numbers<[1], [0], [0], [1], [0, 0, 1, 1], [], []>} : vector<64x128xf32>, vector<128x32xf32>, vector<64x32xf32> -> vector<64x32xf32>
    %87 = arith.addf %76, %86 : vector<64x32xf32>
    %c0_22 = arith.constant 0 : index
    %c0_23 = arith.constant 0 : index
    %88 = vector.load %arg5[%c0_22, %c0_23] : memref<32x32xf32, #tpu.memory_space<vmem>>, vector<32x32xf32>
    %cst_24 = arith.constant dense<0.000000e+00> : vector<64x32xf32>
    %89 = tpu.matmul %87, %88, %cst_24 {dimension_numbers = #tpu.dot_dimension_numbers<[1], [0], [0], [1], [0, 0, 1, 1], [], []>} : vector<64x32xf32>, vector<32x32xf32>, vector<64x32xf32> -> vector<64x32xf32>
    %c0_25 = arith.constant 0 : index
    %c0_26 = arith.constant 0 : index
    %90 = vector.load %arg8[%c0_25, %c0_26] : memref<64x32xf32, #tpu.memory_space<vmem>>, vector<64x32xf32>
    %91 = arith.addf %89, %90 : vector<64x32xf32>
    %cst_27 = arith.constant dense<0.000000e+00> : vector<64xf32>
    %92 = vector.multi_reduction <add>, %91, %cst_27 [1] : vector<64x32xf32> to vector<64xf32>
    %93 = vector.shape_cast %92 : vector<64xf32> to vector<64x1xf32>
    %cst_28 = arith.constant 3.200000e+01 : f32
    %94 = vector.broadcast %cst_28 : f32 to vector<64x1xf32>
    %95 = arith.divf %93, %94 : vector<64x1xf32>
    %96 = vector.broadcast %95 : vector<64x1xf32> to vector<64x32xf32>
    %97 = arith.subf %91, %96 : vector<64x32xf32>
    %98 = arith.mulf %97, %97 : vector<64x32xf32>
    %cst_29 = arith.constant dense<0.000000e+00> : vector<64xf32>
    %99 = vector.multi_reduction <add>, %98, %cst_29 [1] : vector<64x32xf32> to vector<64xf32>
    %100 = vector.shape_cast %99 : vector<64xf32> to vector<64x1xf32>
    %cst_30 = arith.constant 3.200000e+01 : f32
    %101 = vector.broadcast %cst_30 : f32 to vector<64x1xf32>
    %102 = arith.divf %100, %101 : vector<64x1xf32>
    %103 = vector.broadcast %95 : vector<64x1xf32> to vector<64x32xf32>
    %104 = arith.subf %91, %103 : vector<64x32xf32>
    %cst_31 = arith.constant 9.99999974E-6 : f32
    %105 = vector.broadcast %cst_31 : f32 to vector<64x1xf32>
    %106 = arith.addf %102, %105 : vector<64x1xf32>
    %107 = math.rsqrt %106 : vector<64x1xf32>
    %108 = vector.broadcast %107 : vector<64x1xf32> to vector<64x32xf32>
    %109 = arith.mulf %104, %108 : vector<64x32xf32>
    %110 = vector.broadcast %5 : vector<1x32xf32> to vector<64x32xf32>
    %111 = arith.mulf %109, %110 : vector<64x32xf32>
    %112 = vector.broadcast %6 : vector<1x32xf32> to vector<64x32xf32>
    %113 = arith.addf %111, %112 : vector<64x32xf32>
    %c0_32 = arith.constant 0 : index
    %c0_33 = arith.constant 0 : index
    %114 = vector.load %arg6[%c0_32, %c0_33] : memref<32x128xf32, #tpu.memory_space<vmem>>, vector<32x128xf32>
    %cst_34 = arith.constant dense<0.000000e+00> : vector<64x128xf32>
    %115 = tpu.matmul %113, %114, %cst_34 {dimension_numbers = #tpu.dot_dimension_numbers<[1], [0], [0], [1], [0, 0, 1, 1], [], []>} : vector<64x32xf32>, vector<32x128xf32>, vector<64x128xf32> -> vector<64x128xf32>
    %116 = vector.broadcast %2 : vector<1x128xf32> to vector<64x128xf32>
    %117 = arith.addf %115, %116 : vector<64x128xf32>
    %cst_35 = arith.constant 0.000000e+00 : f32
    %118 = vector.broadcast %cst_35 : f32 to vector<64x128xf32>
    %119 = arith.maximumf %117, %118 : vector<64x128xf32>
    %c0_36 = arith.constant 0 : index
    %c0_37 = arith.constant 0 : index
    %120 = vector.load %arg7[%c0_36, %c0_37] : memref<128x32xf32, #tpu.memory_space<vmem>>, vector<128x32xf32>
    %cst_38 = arith.constant dense<0.000000e+00> : vector<64x32xf32>
    %121 = tpu.matmul %119, %120, %cst_38 {dimension_numbers = #tpu.dot_dimension_numbers<[1], [0], [0], [1], [0, 0, 1, 1], [], []>} : vector<64x128xf32>, vector<128x32xf32>, vector<64x32xf32> -> vector<64x32xf32>
    %122 = vector.broadcast %7 : vector<1x32xf32> to vector<64x32xf32>
    %123 = arith.addf %121, %122 : vector<64x32xf32>
    %cst_39 = arith.constant 0.000000e+00 : f32
    %124 = vector.broadcast %cst_39 : f32 to vector<64x32xf32>
    %125 = arith.maximumf %123, %124 : vector<64x32xf32>
    %126 = arith.addf %113, %125 : vector<64x32xf32>
    %cst_40 = arith.constant dense<0.000000e+00> : vector<64xf32>
    %127 = vector.multi_reduction <add>, %126, %cst_40 [1] : vector<64x32xf32> to vector<64xf32>
    %128 = vector.shape_cast %127 : vector<64xf32> to vector<64x1xf32>
    %cst_41 = arith.constant 3.200000e+01 : f32
    %129 = vector.broadcast %cst_41 : f32 to vector<64x1xf32>
    %130 = arith.divf %128, %129 : vector<64x1xf32>
    %131 = vector.broadcast %130 : vector<64x1xf32> to vector<64x32xf32>
    %132 = arith.subf %126, %131 : vector<64x32xf32>
    %133 = arith.mulf %132, %132 : vector<64x32xf32>
    %cst_42 = arith.constant dense<0.000000e+00> : vector<64xf32>
    %134 = vector.multi_reduction <add>, %133, %cst_42 [1] : vector<64x32xf32> to vector<64xf32>
    %135 = vector.shape_cast %134 : vector<64xf32> to vector<64x1xf32>
    %cst_43 = arith.constant 3.200000e+01 : f32
    %136 = vector.broadcast %cst_43 : f32 to vector<64x1xf32>
    %137 = arith.divf %135, %136 : vector<64x1xf32>
    %138 = vector.broadcast %130 : vector<64x1xf32> to vector<64x32xf32>
    %139 = arith.subf %126, %138 : vector<64x32xf32>
    %cst_44 = arith.constant 9.99999974E-6 : f32
    %140 = vector.broadcast %cst_44 : f32 to vector<64x1xf32>
    %141 = arith.addf %137, %140 : vector<64x1xf32>
    %142 = math.rsqrt %141 : vector<64x1xf32>
    %143 = vector.broadcast %142 : vector<64x1xf32> to vector<64x32xf32>
    %144 = arith.mulf %139, %143 : vector<64x32xf32>
    %145 = vector.broadcast %8 : vector<1x32xf32> to vector<64x32xf32>
    %146 = arith.mulf %144, %145 : vector<64x32xf32>
    %147 = vector.broadcast %9 : vector<1x32xf32> to vector<64x32xf32>
    %148 = arith.addf %146, %147 : vector<64x32xf32>
    %149 = vector.extract_strided_slice %148 {offsets = [0, 0], sizes = [16, 32], strides = [1, 1]} : vector<64x32xf32> to vector<16x32xf32>
    %150 = vector.extract_strided_slice %148 {offsets = [16, 0], sizes = [16, 32], strides = [1, 1]} : vector<64x32xf32> to vector<16x32xf32>
    %151 = vector.extract_strided_slice %148 {offsets = [32, 0], sizes = [16, 32], strides = [1, 1]} : vector<64x32xf32> to vector<16x32xf32>
    %152 = vector.extract_strided_slice %148 {offsets = [48, 0], sizes = [16, 32], strides = [1, 1]} : vector<64x32xf32> to vector<16x32xf32>
    %153 = tpu.concatenate %149, %150, %151, %152 in 1 : vector<16x32xf32>, vector<16x32xf32>, vector<16x32xf32>, vector<16x32xf32> -> vector<16x128xf32>
    %c0_45 = arith.constant 0 : index
    %c0_46 = arith.constant 0 : index
    %154 = vector.load %arg11[%c0_45, %c0_46] : memref<16x128xf32, #tpu.memory_space<vmem>>, vector<16x128xf32>
    tpu.vector_store %arg11[%c0_45, %c0_46], %153 {strides = array<i32>} : memref<16x128xf32, #tpu.memory_space<vmem>>, vector<16x128xf32>,
    return
  }
  func.func @transform_0(%arg0: i32) -> (i32, i32) {
    %c0_i32 = arith.constant 0 : i32
    %c0_i32_0 = arith.constant 0 : i32
    return %arg0, %c0_i32 : i32, i32
  }
  func.func @transform_1(%arg0: i32) -> (i32, i32) {
    %c0_i32 = arith.constant 0 : i32
    %c0_i32_0 = arith.constant 0 : i32
    %c0_i32_1 = arith.constant 0 : i32
    return %c0_i32, %c0_i32_0 : i32, i32
  }
  func.func @transform_2(%arg0: i32) -> (i32, i32) {
    %c0_i32 = arith.constant 0 : i32
    %c0_i32_0 = arith.constant 0 : i32
    %c0_i32_1 = arith.constant 0 : i32
    return %c0_i32, %c0_i32_0 : i32, i32
  }
  func.func @transform_3(%arg0: i32) -> (i32, i32) {
    %c0_i32 = arith.constant 0 : i32
    %c0_i32_0 = arith.constant 0 : i32
    %c0_i32_1 = arith.constant 0 : i32
    return %c0_i32, %c0_i32_0 : i32, i32
  }
  func.func @transform_4(%arg0: i32) -> (i32, i32) {
    %c0_i32 = arith.constant 0 : i32
    %c0_i32_0 = arith.constant 0 : i32
    %c0_i32_1 = arith.constant 0 : i32
    return %c0_i32, %c0_i32_0 : i32, i32
  }
  func.func @transform_5(%arg0: i32) -> (i32, i32) {
    %c0_i32 = arith.constant 0 : i32
    %c0_i32_0 = arith.constant 0 : i32
    %c0_i32_1 = arith.constant 0 : i32
    return %c0_i32, %c0_i32_0 : i32, i32
  }
  func.func @transform_6(%arg0: i32) -> (i32, i32) {
    %c0_i32 = arith.constant 0 : i32
    %c0_i32_0 = arith.constant 0 : i32
    %c0_i32_1 = arith.constant 0 : i32
    return %c0_i32, %c0_i32_0 : i32, i32
  }
  func.func @transform_7(%arg0: i32) -> (i32, i32) {
    %c0_i32 = arith.constant 0 : i32
    %c0_i32_0 = arith.constant 0 : i32
    %c0_i32_1 = arith.constant 0 : i32
    return %c0_i32, %c0_i32_0 : i32, i32
  }
  func.func @transform_8(%arg0: i32) -> (i32, i32) {
    %c0_i32 = arith.constant 0 : i32
    %c0_i32_0 = arith.constant 0 : i32
    %c0_i32_1 = arith.constant 0 : i32
    return %c0_i32, %c0_i32_0 : i32, i32
  }
  func.func @transform_9(%arg0: i32) -> (i32, i32) {
    %c0_i32 = arith.constant 0 : i32
    %c0_i32_0 = arith.constant 0 : i32
    %c0_i32_1 = arith.constant 0 : i32
    return %c0_i32, %c0_i32_0 : i32, i32
  }
  func.func @transform_10(%arg0: i32) -> (i32, i32) {
    %c0_i32 = arith.constant 0 : i32
    %c0_i32_0 = arith.constant 0 : i32
    return %arg0, %c0_i32 : i32, i32
  }
}

</mosaic_0001>

<bundles_post_ra>
// kernel: tpu_custom_call.1
= control target key start
LH: loop header
LB: loop body
LE: loop exit
PB: predicated region body
PF: predicated region fallthrough
CT: control target
= control target key end

     0   :  { %15 = vsyncpa [#allocation3], 0  ;;  %s5225_s0 = inlined_call_operand.vmem [shape: f32[256,32], index: 0, kind: input, shape index: {}]   ;;  %s5226_s1 = inlined_call_operand.vmem [shape: f32[32,128], index: 1, kind: input, shape index: {}]   ;;  %s5227_s2 = inlined_call_operand.vmem [shape: f32[128,32], index: 2, kind: input, shape index: {}]   ;;  %s5228_s3 = inlined_call_operand.vmem [shape: f32[32,48], index: 3, kind: input, shape index: {}]   ;;  %s5229_s4 = inlined_call_operand.vmem [shape: f32[32,32], index: 4, kind: input, shape index: {}]   ;;  %s5230_s5 = inlined_call_operand.vmem [shape: f32[32,128], index: 5, kind: input, shape index: {}]   ;;  %s5231_s6 = inlined_call_operand.vmem [shape: f32[128,32], index: 6, kind: input, shape index: {}]   ;;  %s5232_s7 = inlined_call_operand.vmem [shape: f32[64,32], index: 7, kind: input, shape index: {}]   ;;  %s5233_s8 = inlined_call_operand.vmem [shape: f32[16,128], index: 8, kind: input, shape index: {}]   ;;  %s5234_s9 = inlined_call_operand.vmem [shape: f32[64,128], index: 9, kind: input, shape index: {}]   ;;  %s5235_s10 = inlined_call_operand.hbm [shape: f32[32,128], index: 10, kind: output, shape index: {}]  }
   0x1   :  { %17 = vsyncpa [#allocation3 + $0x1], 0  ;;  %s4104_s13 = smov 0   ;;  %s4106_s14 = smov 0  }
   0x2   :  { %s4108_s15 = smov 0   ;;  %s4110_s16 = smov 0  }
   0x3 LB: > { %s4125_s17 = sadd.s32 4294967295, %s4040_s16   ;;  %s2926_s18 = sadd.s32 4294967294, %s4040_s16   ;;  %s4040_s16 = sphi %s4110_s16, %s5247_s16   ;;  %s4036_s15 = sphi %s4108_s15, %s5246_s15   ;;  %s4032_s14 = sphi %s4106_s14, %s5245_s14   ;;  %s4028_s13 = sphi %s4104_s13, %s5244_s13  }
   0x4   : > { %s4129_s19 = sadd.s32 1, %s4040_s16   ;;  %s245_s20 = sadd.s32 1, %s4036_s15 }
   0x5   : > { %s242_s21 = ssub.s32 %s4040_s16, %s4129_s19  ;;  %p255_p0 = scmp.ne.s32.totalorder %s4036_s15, %s4032_s14 }
   0x6   : > { %p243_p1 = scmp.eq.s32.totalorder %s242_s21, 0  ;;  %p256_p2 = scmp.eq.s32.totalorder %s4125_s17, 1 }
   0x7   : > { %p261_p3 = scmp.ne.s32.totalorder %s4032_s14, %s4028_s13  ;;  %p262_p4 = scmp.eq.s32.totalorder %s2926_s18, 1 }
   0x8   : > { %s4140_s22 = scalar_select %p243_p1, %s4036_s15, %s245_s20  }
   0x9   : > { %p4142_p5 = por %p256_p2, %p255_p0  ;;  %p4146_p6 = por %p262_p4, %p261_p3 }
   0xa   : > { %p2929_p7 = scmp.ge.s32.totalorder %s4040_s16, 1  ;;  %p316_p8 = scmp.lt.s32.totalorder %s4040_s16, 3 }
   0xc   : > { %p317_p9 = pnand %p2929_p7, %p316_p8 }
   0xd   : > { %v379_v0 = vld [vmem:[%s5226_s1] sm:$0xff] (!%p317_p9)  ;;  %v380_v1 = vld [vmem:[%s5226_s1 + $0x8] sm:$0xff] (!%p317_p9)  ;;  %v381_v2 = vld [vmem:[%s5226_s1 + $0x10] sm:$0xff] (!%p317_p9)  ;;  %s2931_s11 = sshll.u32 (!%p317_p9), %s4125_s17, 4  ;;  %vm387_vm0 = vcmask (!%p317_p9), 261120   ;;  %v383_v52 = vlaneseq (!%p317_p9)  ;;  %vm979_vm1 = vcmask (!%p317_p9), 392448  }
   0xe   : > { %320 = sbr.rel (%p317_p9) target bundleno = 2726 (0xaa6), region = 60  ;;  %v3583_v3 = vpack.c.bf16 (!%p317_p9), %v380_v1, %v379_v0  ;;  %v382_v4 = vld [vmem:[%s5226_s1 + $0x18] sm:$0xff] (!%p317_p9)  ;;  %p355_p10 = scmp.lt.s32.totalorder (!%p317_p9), %s2931_s11, 31  ;;  %v597_v5 = vld [vmem:[%s5227_s2] sm:$0xff] (!%p317_p9)  ;;  %v598_v6 = vld [vmem:[%s5227_s2 + $0x8] sm:$0xff] (!%p317_p9)  ;;  %vm2845_vm2 = vcmask (!%p317_p9), 785408  }
   0xf   : > { %v3587_v7 = vpack.c.bf16 (!%p317_p9), %v382_v4, %v381_v2  ;;  %v3591_v8 = vpack.c.bf16 (!%p317_p9), %v598_v6, %v597_v5  ;;  %v599_v9 = vld [vmem:[%s5227_s2 + $0x10] sm:$0xff] (!%p317_p9)  ;;  %v600_v10 = vld [vmem:[%s5227_s2 + $0x18] sm:$0xff] (!%p317_p9)  ;;  %v601_v12 = vld [vmem:[%s5227_s2 + $0x20] sm:$0xff] (!%p317_p9)  ;;  %v4262_v53 = vshrl.u32 (!%p317_p9), %v383_v52, 7  ;;  %s4042_s30 = smov (!%p317_p9), 96   ;;  %s4044_s20 = smov (!%p317_p9), 32  }
  0x10   : > { %3584 = vmatprep.subr.bf16.mxu0 (!%p317_p9), %v3583_v3  ;;  %v3595_v11 = vpack.c.bf16 (!%p317_p9), %v600_v10, %v599_v9  ;;  %v602_v13 = vld [vmem:[%s5227_s2 + $0x28] sm:$0xff] (!%p317_p9)  ;;  %v603_v16 = vld [vmem:[%s5227_s2 + $0x30] sm:$0xff] (!%p317_p9)  ;;  %v604_v17 = vld [vmem:[%s5227_s2 + $0x38] sm:$0xff] (!%p317_p9)  ;;  %s4045_s21 = smov (!%p317_p9), 64   ;;  %vm2842_vm3 = vcmask (!%p317_p9), 523264   ;;  %s2986_s29 = sshll.u32 (!%p317_p9), %s4125_s17, 8 }
  0x11   : > { %3586 = vmatpush3.bf16.msra.mxu0 (!%p317_p9), %v3583_v3  ;;  %3592 = vmatprep.subr.bf16.mxu1 (!%p317_p9), %v3591_v8  ;;  %v3599_v14 = vpack.c.bf16 (!%p317_p9), %v602_v13, %v601_v12  ;;  %v3603_v20 = vpack.c.bf16 (!%p317_p9), %v604_v17, %v603_v16  ;;  %v605_v21 = vld [vmem:[%s5227_s2 + $0x40] sm:$0xff] (!%p317_p9)  ;;  %v606_v22 = vld [vmem:[%s5227_s2 + $0x48] sm:$0xff] (!%p317_p9)  ;;  %v607_v26 = vld [vmem:[%s5227_s2 + $0x50] sm:$0xff] (!%p317_p9)  ;;  %v4265_v54 = vsub.s32 (!%p317_p9), 0, %v4262_v53 }
  0x12   : > { %3588 = vmatprep.subr.bf16.mxu0 (!%p317_p9), %v3587_v7  ;;  %3594 = vmatpush3.bf16.msra.mxu1 (!%p317_p9), %v3591_v8  ;;  %v3607_v25 = vpack.c.bf16 (!%p317_p9), %v606_v22, %v605_v21  ;;  %v608_v27 = vld [vmem:[%s5227_s2 + $0x58] sm:$0xff] (!%p317_p9)  ;;  %v609_v31 = vld [vmem:[%s5227_s2 + $0x60] sm:$0xff] (!%p317_p9)  ;;  %v610_v32 = vld [vmem:[%s5227_s2 + $0x68] sm:$0xff] (!%p317_p9) }
  0x13   : > { %3596 = vmatprep.subr.bf16.mxu1 (!%p317_p9), %v3595_v11  ;;  %v3611_v30 = vpack.c.bf16 (!%p317_p9), %v608_v27, %v607_v26  ;;  %v3615_v35 = vpack.c.bf16 (!%p317_p9), %v610_v32, %v609_v31  ;;  %v611_v43 = vld [vmem:[%s5227_s2 + $0x70] sm:$0xff] (!%p317_p9)  ;;  %v612_v44 = vld [vmem:[%s5227_s2 + $0x78] sm:$0xff] (!%p317_p9)  ;;  %v778_v46 = vld [vmem:[%s5228_s3] sm:$0xff] (!%p317_p9) }
  0x14   : > { %v3619_v45 = vpack.c.bf16 (!%p317_p9), %v612_v44, %v611_v43  ;;  %v779_v47 = vld [vmem:[%s5228_s3 + $0x8] sm:$0xff] (!%p317_p9)  ;;  %v780_v48 = vld [vmem:[%s5228_s3 + $0x10] sm:$0xff] (!%p317_p9)  ;;  %v781_v50 = vld [vmem:[%s5228_s3 + $0x18] sm:$0xff] (!%p317_p9) }
  0x15   : > { %s5249_s11 = smov (!%p355_p10, %s2931_s11), 31  ;;  %3590 = vmatpush3.bf16.msra.mxu0 %v3587_v7  ;;  %v3623_v49 = vpack.c.bf16 %v779_v47, %v778_v46  ;;  %v3627_v51 = vpack.c.bf16 %v781_v50, %v780_v48  ;;  %v4270_v55 = vld [vmem:[%s5233_s8] sm:$0xff] }
  0x16   : > { %s2932_s25 = sshll.u32 %s5249_s11, 3  ;;  %3598 = vmatpush3.bf16.msra.mxu1 %v3595_v11  ;;  %v386_v56 = vrot.slane %v4270_v55, %v4265_v54 }
  0x17   : > { %s4186_s28 = scalar_lea.vmem %s5225_s0, %s2932_s25  ;;  %3600 = vmatprep.subr.bf16.mxu1 %v3599_v14  ;;  %3624 = vmatprep.subr.bf16.mxu0 %v3623_v49  ;;  %s351_s25 = sand.u32 1, %s4032_s14  }
  0x18   : > { %v363_v15 = vld [vmem:[%s4186_s28] sm:$0xff]  ;;  %v364_v18 = vld [vmem:[%s4186_s28 + $0x8] sm:$0xff]  ;;  %v365_v19 = vld [vmem:[%s4186_s28 + $0x10] sm:$0xff]  ;;  %s2930_s26 = sshll.u32 %s351_s25, 4  ;;  %s5184_s18 = scalar_lea.sflag [#allocation3], %s351_s25 }
  0x19   : > { %3211 = vmatprep.mubr.msk.f32.mxu0 %vm387_vm0, %v363_v15  ;;  %v366_v23 = vld [vmem:[%s4186_s28 + $0x18] sm:$0xff]  ;;  %v367_v24 = vld [vmem:[%s4186_s28 + $0x20] sm:$0xff]  ;;  %v368_v28 = vld [vmem:[%s4186_s28 + $0x28] sm:$0xff] }
  0x1a   : > { %3212 = vmatmul.mubr.msk.f32.vlgmr.msra.gmra.mrb[0].mxu0 %vm387_vm0, %v364_v18  ;;  %3602 = vmatpush3.bf16.msra.mxu1 %v3599_v14  ;;  %v369_v29 = vld [vmem:[%s4186_s28 + $0x30] sm:$0xff]  ;;  %v370_v33 = vld [vmem:[%s4186_s28 + $0x38] sm:$0xff]  ;;  %v371_v34 = vld [vmem:[%s4186_s28 + $0x40] sm:$0xff] }
  0x1b   : > { %3214 = vmatprep.mubr.msk.f32.mxu0 %vm387_vm0, %v365_v19  ;;  %3604 = vmatprep.subr.bf16.mxu1 %v3603_v20  ;;  %v372_v36 = vld [vmem:[%s4186_s28 + $0x48] sm:$0xff]  ;;  %v373_v37 = vld [vmem:[%s4186_s28 + $0x50] sm:$0xff]  ;;  %v374_v38 = vld [vmem:[%s4186_s28 + $0x58] sm:$0xff] }
  0x1c   : > { %v375_v39 = vld [vmem:[%s4186_s28 + $0x60] sm:$0xff]  ;;  %v376_v40 = vld [vmem:[%s4186_s28 + $0x68] sm:$0xff]  ;;  %v377_v41 = vld [vmem:[%s4186_s28 + $0x70] sm:$0xff]  ;;  %3626 = vmatpush3.bf16.msra.mxu0 %v3623_v49 }
  0x1d   : > { %v378_v42 = vld [vmem:[%s4186_s28 + $0x78] sm:$0xff]  ;;  %3628 = vmatprep.subr.bf16.mxu0 %v3627_v51  ;;  %s5182_s28 = scalar_lea.hbm %s5235_s10, %s2986_s29 }
  0x1e   : > { %3215 = vmatmul.mubr.msk.f32.gmra.mrb[2].mxu0 %vm387_vm0, %v366_v23  ;;  %3606 = vmatpush3.bf16.msra.mxu1 %v3603_v20 }
  0x1f   : > { %3217 = vmatprep.mubr.msk.f32.mxu0 %vm387_vm0, %v367_v24  ;;  %3608 = vmatprep.subr.bf16.mxu1 %v3607_v25 }
  0x20   : > { %3630 = vmatpush3.bf16.msra.mxu0 %v3627_v51 }
  0x22   : > { %3218 = vmatmul.mubr.msk.f32.gmra.mrb[4].mxu0 %vm387_vm0, %v368_v28  ;;  %3610 = vmatpush3.bf16.msra.mxu1 %v3607_v25 }
  0x23   : > { %3220 = vmatprep.mubr.msk.f32.mxu0 %vm387_vm0, %v369_v29  ;;  %3612 = vmatprep.subr.bf16.mxu1 %v3611_v30 }
  0x26   : > { %3221 = vmatmul.mubr.msk.f32.gmra.mrb[6].mxu0 %vm387_vm0, %v370_v33  ;;  %3614 = vmatpush3.bf16.msra.mxu1 %v3611_v30 }
  0x27   : > { %3223 = vmatprep.mubr.msk.f32.mxu0 %vm387_vm0, %v371_v34  ;;  %3616 = vmatprep.subr.bf16.mxu1 %v3615_v35 }
  0x2a   : > { %3224 = vmatmul.mubr.msk.f32.gmra.mrb[8].mxu0 %vm387_vm0, %v372_v36  ;;  %3618 = vmatpush3.bf16.msra.mxu1 %v3615_v35 }
  0x2b   : > { %3226 = vmatprep.mubr.msk.f32.mxu0 %vm387_vm0, %v373_v37  ;;  %3620 = vmatprep.subr.bf16.mxu1 %v3619_v45 }
  0x2e   : > { %3227 = vmatmul.mubr.msk.f32.gmra.mrb[10].mxu0 %vm387_vm0, %v374_v38  ;;  %3622 = vmatpush3.bf16.msra.mxu1 %v3619_v45 }
  0x2f   : > { %3229 = vmatprep.mubr.msk.f32.mxu0 %vm387_vm0, %v375_v39 }
  0x32   : > { %3230 = vmatmul.mubr.msk.f32.gmra.mrb[12].mxu0 %vm387_vm0, %v376_v40 }
  0x33   : > { %3232 = vmatprep.mubr.msk.f32.mxu0 %vm387_vm0, %v377_v41  ;;  %v615_v41 = vsub.s32 2, %v4262_v53 }
  0x36   : > { %3233 = vmatmul.mubr.msk.f32.gmra.mrb[14].mxu0 %vm387_vm0, %v378_v42  ;;  %v616_v42 = vrot.slane %v4270_v55, %v615_v41 }
  0xed   : > { %v3213_v57 = vpop.f32.mrb[0].mxu0 }
  0xee   : > { %v508_v58 = vadd.f32 %v3213_v57, %v386_v56  ;;  %v502_v59 = vpop.f32.mrb[1].mxu0 }
  0xef   : > { %v503_v60 = vadd.f32 %v502_v59, %v386_v56 }
  0xf0   : > { %v582_v63 = vmax.f32 %v508_v58, 0.0 }
  0xf1   : > { %v3216_v61 = vpop.f32.mrb[2].mxu0  ;;  %v581_v62 = vmax.f32 %v503_v60, 0.0 }
  0xf2   : > { %v518_v0 = vadd.f32 %v3216_v61, %v386_v56  ;;  %v512_v1 = vpop.f32.mrb[3].mxu0 }
  0xf3   : > { %v513_v2 = vadd.f32 %v512_v1, %v386_v56  ;;  %3267 = vmatprep.mubr.f32.mxu1 %v581_v62 }
  0xf4   : > { %v584_v3 = vmax.f32 %v518_v0, 0.0  ;;  %3268 = vmatmul.mubr.f32.vlgmr.msra.gmra.mrb[0].mxu1 %v582_v63 }
  0xf5   : > { %v583_v4 = vmax.f32 %v513_v2, 0.0  ;;  %v3219_v5 = vpop.f32.mrb[4].mxu0 }
  0xf6   : > { %v528_v6 = vadd.f32 %v3219_v5, %v386_v56  ;;  %v522_v7 = vpop.f32.mrb[5].mxu0 }
  0xf7   : > { %v523_v8 = vadd.f32 %v522_v7, %v386_v56  ;;  %3270 = vmatprep.mubr.f32.mxu1 %v583_v4 }
  0xf8   : > { %v586_v9 = vmax.f32 %v528_v6, 0.0  ;;  %3271 = vmatmul.mubr.f32.gmra.mrb[2].mxu1 %v584_v3 }
  0xf9   : > { %v585_v10 = vmax.f32 %v523_v8, 0.0  ;;  %v3222_v11 = vpop.f32.mrb[6].mxu0 }
  0xfa   : > { %v538_v12 = vadd.f32 %v3222_v11, %v386_v56  ;;  %v532_v13 = vpop.f32.mrb[7].mxu0 }
  0xfb   : > { %v533_v14 = vadd.f32 %v532_v13, %v386_v56  ;;  %3273 = vmatprep.mubr.f32.mxu1 %v585_v10 }
  0xfc   : > { %v588_v15 = vmax.f32 %v538_v12, 0.0  ;;  %3274 = vmatmul.mubr.f32.gmra.mrb[4].mxu1 %v586_v9 }
  0xfd   : > { %v587_v16 = vmax.f32 %v533_v14, 0.0  ;;  %v3225_v17 = vpop.f32.mrb[8].mxu0 }
  0xfe   : > { %v548_v18 = vadd.f32 %v3225_v17, %v386_v56  ;;  %v542_v19 = vpop.f32.mrb[9].mxu0 }
  0xff   : > { %v543_v20 = vadd.f32 %v542_v19, %v386_v56  ;;  %3276 = vmatprep.mubr.f32.mxu1 %v587_v16 }
 0x100   : > { %v590_v21 = vmax.f32 %v548_v18, 0.0  ;;  %3277 = vmatmul.mubr.f32.gmra.mrb[6].mxu1 %v588_v15 }
 0x101   : > { %v589_v22 = vmax.f32 %v543_v20, 0.0  ;;  %v3228_v23 = vpop.f32.mrb[10].mxu0 }
 0x102   : > { %v558_v24 = vadd.f32 %v3228_v23, %v386_v56  ;;  %v552_v25 = vpop.f32.mrb[11].mxu0 }
 0x103   : > { %v553_v26 = vadd.f32 %v552_v25, %v386_v56  ;;  %3279 = vmatprep.mubr.f32.mxu1 %v589_v22 }
 0x104   : > { %v592_v27 = vmax.f32 %v558_v24, 0.0  ;;  %3280 = vmatmul.mubr.f32.gmra.mrb[8].mxu1 %v590_v21 }
 0x105   : > { %v591_v28 = vmax.f32 %v553_v26, 0.0  ;;  %v3231_v29 = vpop.f32.mrb[12].mxu0 }
 0x106   : > { %v568_v30 = vadd.f32 %v3231_v29, %v386_v56  ;;  %v562_v31 = vpop.f32.mrb[13].mxu0 }
 0x107   : > { %v563_v32 = vadd.f32 %v562_v31, %v386_v56  ;;  %3282 = vmatprep.mubr.f32.mxu1 %v591_v28  ;;  %v5236_v31 = vsub.s32 1, %v4262_v53 }
 0x108   : > { %v594_v33 = vmax.f32 %v568_v30, 0.0  ;;  %3283 = vmatmul.mubr.f32.gmra.mrb[10].mxu1 %v592_v27  ;;  %v784_v30 = vsub.s32 3, %v4262_v53 }
 0x109   : > { %v593_v34 = vmax.f32 %v563_v32, 0.0  ;;  %v3234_v35 = vpop.f32.mrb[14].mxu0  ;;  %v362_v32 = vld [vmem:[%s5233_s8 + $0x8] sm:$0xff] }
 0x10a   : > { %v578_v36 = vadd.f32 %v3234_v35, %v386_v56  ;;  %v572_v37 = vpop.f32.mrb[15].mxu0  ;;  %v4308_v35 = vrot.slane %v362_v32, %v5236_v31 }
 0x10b   : > { %v573_v38 = vadd.f32 %v572_v37, %v386_v56  ;;  %3285 = vmatprep.mubr.f32.mxu1 %v593_v34  ;;  %v4304_v34 = vrot.slane %v362_v32, %v615_v41 }
 0x10c   : > { %v596_v39 = vmax.f32 %v578_v36, 0.0  ;;  %3286 = vmatmul.mubr.f32.gmra.mrb[12].mxu1 %v594_v33  ;;  %v4300_v33 = vrot.slane %v4270_v55, %v784_v30 }
 0x10d   : > { %v595_v40 = vmax.f32 %v573_v38, 0.0  ;;  %v4313_v38 = vrot.slane %v362_v32, %v784_v30 }
 0x10f   : > { %3288 = vmatprep.mubr.f32.mxu1 %v595_v40 }
 0x110   : > { %3289 = vmatmul.mubr.f32.gmra.mrb[14].mxu1 %v596_v39 }
 0x1c7   : > { %v3269_v43 = vpop.f32.mrb[0].mxu1 }
 0x1c8   : > { %v689_v44 = vadd.f32 %v3269_v43, %v616_v42  ;;  %v683_v45 = vpop.f32.mrb[1].mxu1 }
 0x1c9   : > { %v684_v46 = vadd.f32 %v683_v45, %v616_v42 }
 0x1ca   : > { %v763_v49 = vmax.f32 %v689_v44, 0.0 }
 0x1cb   : > { %v762_v47 = vmax.f32 %v684_v46, 0.0  ;;  %v3272_v48 = vpop.f32.mrb[2].mxu1 }
 0x1cc   : > { %v699_v50 = vadd.f32 %v3272_v48, %v616_v42  ;;  %v693_v51 = vpop.f32.mrb[3].mxu1 }
 0x1cd   : > { %v694_v52 = vadd.f32 %v693_v51, %v616_v42  ;;  %3299 = vmatprep.mubr.msk.f32.mxu0 %vm387_vm0, %v762_v47 }
 0x1ce   : > { %v765_v56 = vmax.f32 %v699_v50, 0.0  ;;  %3300 = vmatmul.mubr.msk.f32.vlgmr.msra.gmra.mrb[16].mxu0 %vm387_vm0, %v763_v49 }
 0x1cf   : > { %v764_v57 = vmax.f32 %v694_v52, 0.0  ;;  %v3275_v58 = vpop.f32.mrb[4].mxu1 }
 0x1d0   : > { %v709_v59 = vadd.f32 %v3275_v58, %v616_v42  ;;  %v703_v60 = vpop.f32.mrb[5].mxu1 }
 0x1d1   : > { %v704_v61 = vadd.f32 %v703_v60, %v616_v42  ;;  %3302 = vmatprep.mubr.msk.f32.mxu0 %vm387_vm0, %v764_v57 }
 0x1d2   : > { %v767_v62 = vmax.f32 %v709_v59, 0.0  ;;  %3303 = vmatmul.mubr.msk.f32.gmra.mrb[18].mxu0 %vm387_vm0, %v765_v56 }
 0x1d3   : > { %v766_v63 = vmax.f32 %v704_v61, 0.0  ;;  %v3278_v0 = vpop.f32.mrb[6].mxu1 }
 0x1d4   : > { %v719_v1 = vadd.f32 %v3278_v0, %v616_v42  ;;  %v713_v2 = vpop.f32.mrb[7].mxu1 }
 0x1d5   : > { %v714_v3 = vadd.f32 %v713_v2, %v616_v42  ;;  %3305 = vmatprep.mubr.msk.f32.mxu0 %vm387_vm0, %v766_v63 }
 0x1d6   : > { %v769_v4 = vmax.f32 %v719_v1, 0.0  ;;  %3306 = vmatmul.mubr.msk.f32.gmra.mrb[20].mxu0 %vm387_vm0, %v767_v62 }
 0x1d7   : > { %v768_v5 = vmax.f32 %v714_v3, 0.0  ;;  %v3281_v6 = vpop.f32.mrb[8].mxu1 }
 0x1d8   : > { %v729_v7 = vadd.f32 %v3281_v6, %v616_v42  ;;  %v723_v8 = vpop.f32.mrb[9].mxu1 }
 0x1d9   : > { %v724_v9 = vadd.f32 %v723_v8, %v616_v42  ;;  %3308 = vmatprep.mubr.msk.f32.mxu0 %vm387_vm0, %v768_v5 }
 0x1da   : > { %v771_v10 = vmax.f32 %v729_v7, 0.0  ;;  %3309 = vmatmul.mubr.msk.f32.gmra.mrb[22].mxu0 %vm387_vm0, %v769_v4 }
 0x1db   : > { %v770_v11 = vmax.f32 %v724_v9, 0.0  ;;  %v3284_v12 = vpop.f32.mrb[10].mxu1 }
 0x1dc   : > { %v739_v13 = vadd.f32 %v3284_v12, %v616_v42  ;;  %v733_v14 = vpop.f32.mrb[11].mxu1 }
 0x1dd   : > { %v734_v15 = vadd.f32 %v733_v14, %v616_v42  ;;  %3311 = vmatprep.mubr.msk.f32.mxu0 %vm387_vm0, %v770_v11 }
 0x1de   : > { %v773_v16 = vmax.f32 %v739_v13, 0.0  ;;  %3312 = vmatmul.mubr.msk.f32.gmra.mrb[24].mxu0 %vm387_vm0, %v771_v10 }
 0x1df   : > { %v772_v17 = vmax.f32 %v734_v15, 0.0  ;;  %v3287_v18 = vpop.f32.mrb[12].mxu1 }
 0x1e0   : > { %v749_v19 = vadd.f32 %v3287_v18, %v616_v42  ;;  %v743_v20 = vpop.f32.mrb[13].mxu1 }
 0x1e1   : > { %v744_v21 = vadd.f32 %v743_v20, %v616_v42  ;;  %3314 = vmatprep.mubr.msk.f32.mxu0 %vm387_vm0, %v772_v17 }
 0x1e2   : > { %v775_v22 = vmax.f32 %v749_v19, 0.0  ;;  %3315 = vmatmul.mubr.msk.f32.gmra.mrb[26].mxu0 %vm387_vm0, %v773_v16 }
 0x1e3   : > { %v774_v23 = vmax.f32 %v744_v21, 0.0  ;;  %v3290_v24 = vpop.f32.mrb[14].mxu1 }
 0x1e4   : > { %v759_v25 = vadd.f32 %v3290_v24, %v616_v42  ;;  %v753_v26 = vpop.f32.mrb[15].mxu1 }
 0x1e5   : > { %v754_v27 = vadd.f32 %v753_v26, %v616_v42  ;;  %3317 = vmatprep.mubr.msk.f32.mxu0 %vm387_vm0, %v774_v23 }
 0x1e6   : > { %v777_v28 = vmax.f32 %v759_v25, 0.0  ;;  %3318 = vmatmul.mubr.msk.f32.gmra.mrb[28].mxu0 %vm387_vm0, %v775_v22 }
 0x1e7   : > { %v776_v29 = vmax.f32 %v754_v27, 0.0 }
 0x1e9   : > { %3320 = vmatprep.mubr.msk.f32.mxu0 %vm387_vm0, %v776_v29 }
 0x1ea   : > { %3321 = vmatmul.mubr.msk.f32.gmra.mrb[30].mxu0 %vm387_vm0, %v777_v28 }
 0x2a1   : > { %v3301_v36 = vpop.f32.mrb[16].mxu0 }
 0x2a2   : > { %v4311_v37 = vadd.f32 %v3301_v36, %v4300_v33  ;;  %v900_v39 = vpop.f32.mrb[17].mxu0 }
 0x2a3   : > { %v4316_v40 = vadd.f32 %v900_v39, %v4300_v33 }
 0x2a4   : > { %v987_v55 = vsel %vm979_vm1, %v4311_v37, -inf  ;;  %v1535_v41 = vmul.f32 %v4304_v34, %v4311_v37  ;;  %v1462_v42 = vmul.f32 %v4308_v35, %v4311_v37  ;;  %v1818_v52 = vmul.f32 %v4313_v38, %v4311_v37 }
 0x2a5   : > { %v988_v43 = vrot.slane %v987_v55, 4  ;;  %v980_v44 = vsel %vm979_vm1, %v4316_v40, -inf  ;;  %v3304_v45 = vpop.f32.mrb[18].mxu0  ;;  %v1534_v46 = vmul.f32 %v4304_v34, %v4316_v40  ;;  %v1461_v47 = vmul.f32 %v4308_v35, %v4316_v40 }
 0x2a6   : > { %v981_v48 = vrot.slane %v980_v44, 4  ;;  %v4331_v49 = vadd.f32 %v3304_v45, %v4300_v33  ;;  %v910_v50 = vpop.f32.mrb[19].mxu0  ;;  %v1817_v51 = vmul.f32 %v4313_v38, %v4316_v40 }
 0x2a7   : > { %v4338_v56 = vadd.f32 %v910_v50, %v4300_v33  ;;  %v3631_v57 = vpack.c.bf16 %v1535_v41, %v1534_v46  ;;  %v3663_v58 = vpack.c.bf16 %v1462_v42, %v1461_v47  ;;  %v989_v59 = vmax.f32 %v987_v55, %v988_v43 }
 0x2a8   : > { %v982_v60 = vmax.f32 %v980_v44, %v981_v48  ;;  %v1001_v61 = vsel %vm979_vm1, %v4331_v49, -inf  ;;  %v1464_v62 = vmul.f32 %v4308_v35, %v4331_v49  ;;  %v1537_v63 = vmul.f32 %v4304_v34, %v4331_v49 }
 0x2a9   : > { %v1002_v0 = vrot.slane %v1001_v61, 4  ;;  %v4348_v1 = vsel %vm979_vm1, %v4338_v56, -inf  ;;  %v3307_v2 = vpop.f32.mrb[20].mxu0  ;;  %3632 = vmatprep.subr.bf16.mxu0 %v3631_v57  ;;  %3664 = vmatprep.subr.bf16.mxu1 %v3663_v58  ;;  %v1463_v3 = vmul.f32 %v4308_v35, %v4338_v56  ;;  %v1536_v4 = vmul.f32 %v4304_v34, %v4338_v56 }
 0x2aa   : > { %v983_v5 = vrot.slane %v982_v60, 2  ;;  %v995_v6 = vrot.slane %v4348_v1, 4  ;;  %v4356_v7 = vadd.f32 %v3307_v2, %v4300_v33  ;;  %v920_v8 = vpop.f32.mrb[21].mxu0  ;;  %3634 = vmatpush3.bf16.msra.mxu0 %v3631_v57  ;;  %3666 = vmatpush3.bf16.msra.mxu1 %v3663_v58  ;;  %v4358_v9 = vpack.c.bf16 %v1818_v52, %v1817_v51 }
 0x2ab   : > { %v4360_v10 = vmax.f32 %v1001_v61, %v1002_v0  ;;  %v4363_v11 = vadd.f32 %v920_v8, %v4300_v33  ;;  %v3667_v12 = vpack.c.bf16 %v1464_v62, %v1463_v3  ;;  %v3635_v13 = vpack.c.bf16 %v1537_v63, %v1536_v4 }
 0x2ac   : > { %v1015_v14 = vsel %vm979_vm1, %v4356_v7, -inf  ;;  %v1466_v15 = vmul.f32 %v4308_v35, %v4356_v7  ;;  %v1539_v16 = vmul.f32 %v4304_v34, %v4356_v7  ;;  %v990_v17 = vrot.slane %v989_v59, 2 }
 0x2ad   : > { %v1004_v18 = vrot.slane %v4360_v10, 2  ;;  %v1016_v19 = vrot.slane %v1015_v14, 4  ;;  %v1008_v20 = vsel %vm979_vm1, %v4363_v11, -inf  ;;  %v3310_v21 = vpop.f32.mrb[22].mxu0  ;;  %3668 = vmatprep.subr.bf16.mxu1 %v3667_v12  ;;  %3636 = vmatprep.subr.bf16.mxu0 %v3635_v13  ;;  %v1465_v22 = vmul.f32 %v4308_v35, %v4363_v11 }
 0x2ae   : > { %v1009_v23 = vrot.slane %v1008_v20, 4  ;;  %v4377_v24 = vadd.f32 %v3310_v21, %v4300_v33  ;;  %v930_v25 = vpop.f32.mrb[23].mxu0  ;;  %3670 = vmatpush3.bf16.msra.mxu1 %v3667_v12  ;;  %3638 = vmatpush3.bf16.msra.mxu0 %v3635_v13  ;;  %v1538_v26 = vmul.f32 %v4304_v34, %v4363_v11  ;;  %v4381_v27 = vmax.f32 %v989_v59, %v990_v17 }
 0x2af   : > { %v4383_v28 = vmax.f32 %v1015_v14, %v1016_v19  ;;  %v4386_v29 = vadd.f32 %v930_v25, %v4300_v33  ;;  %v3671_v30 = vpack.c.bf16 %v1466_v15, %v1465_v22  ;;  %v4388_v32 = vmax.f32 %v982_v60, %v983_v5 }
 0x2b0   : > { %v4390_v36 = vmax.f32 %v1008_v20, %v1009_v23  ;;  %v1029_v39 = vsel %vm979_vm1, %v4377_v24, -inf  ;;  %v1468_v55 = vmul.f32 %v4308_v35, %v4377_v24  ;;  %v3639_v41 = vpack.c.bf16 %v1539_v16, %v1538_v26 }
 0x2b1   : > { %v1018_v42 = vrot.slane %v4383_v28, 2  ;;  %v1030_v43 = vrot.slane %v1029_v39, 4  ;;  %v1022_v44 = vsel %vm979_vm1, %v4386_v29, -inf  ;;  %v3313_v45 = vpop.f32.mrb[24].mxu0  ;;  %3672 = vmatprep.subr.bf16.mxu1 %v3671_v30  ;;  %v1467_v46 = vmul.f32 %v4308_v35, %v4386_v29 }
 0x2b2   : > { %v1011_v47 = vrot.slane %v4390_v36, 2  ;;  %v1023_v48 = vrot.slane %v1022_v44, 4  ;;  %v4403_v50 = vadd.f32 %v3313_v45, %v4300_v33  ;;  %v940_v51 = vpop.f32.mrb[25].mxu0  ;;  %3674 = vmatpush3.bf16.msra.mxu1 %v3671_v30  ;;  %3640 = vmatprep.subr.bf16.mxu0 %v3639_v41  ;;  %v1540_v52 = vmul.f32 %v4304_v34, %v4386_v29 }
 0x2b3   : > { %v4407_v57 = vmax.f32 %v1029_v39, %v1030_v43  ;;  %v4410_v58 = vadd.f32 %v940_v51, %v4300_v33  ;;  %v3675_v59 = vpack.c.bf16 %v1468_v55, %v1467_v46  ;;  %3642 = vmatpush3.bf16.msra.mxu0 %v3639_v41  ;;  %v1541_v60 = vmul.f32 %v4304_v34, %v4377_v24 }
 0x2b4   : > { %v4414_v61 = vmax.f32 %v1022_v44, %v1023_v48  ;;  %v1043_v62 = vsel %vm979_vm1, %v4403_v50, -inf  ;;  %v1470_v63 = vmul.f32 %v4308_v35, %v4403_v50  ;;  %v1543_v0 = vmul.f32 %v4304_v34, %v4403_v50 }
 0x2b5   : > { %v1032_v2 = vrot.slane %v4407_v57, 2  ;;  %v1044_v3 = vrot.slane %v1043_v62, 4  ;;  %v1036_v4 = vsel %vm979_vm1, %v4410_v58, -inf  ;;  %v3316_v5 = vpop.f32.mrb[26].mxu0  ;;  %3676 = vmatprep.subr.bf16.mxu1 %v3675_v59  ;;  %v1469_v8 = vmul.f32 %v4308_v35, %v4410_v58 }
 0x2b6   : > { %v1025_v12 = vrot.slane %v4414_v61, 2  ;;  %v1037_v13 = vrot.slane %v1036_v4, 4  ;;  %v4429_v14 = vadd.f32 %v3316_v5, %v4300_v33  ;;  %v950_v15 = vpop.f32.mrb[27].mxu0  ;;  %3678 = vmatpush3.bf16.msra.mxu1 %v3675_v59  ;;  %v3643_v16 = vpack.c.bf16 %v1541_v60, %v1540_v52 }
 0x2b7   : > { %v4431_v17 = vmax.f32 %v1043_v62, %v1044_v3  ;;  %v4434_v19 = vadd.f32 %v950_v15, %v4300_v33  ;;  %v3679_v20 = vpack.c.bf16 %v1470_v63, %v1469_v8  ;;  %v1542_v21 = vmul.f32 %v4304_v34, %v4410_v58 }
 0x2b8   : > { %v4438_v22 = vmax.f32 %v1036_v4, %v1037_v13  ;;  %v1057_v23 = vsel %vm979_vm1, %v4429_v14, -inf  ;;  %v1472_v25 = vmul.f32 %v4308_v35, %v4429_v14  ;;  %3644 = vmatprep.subr.bf16.mxu0 %v3643_v16  ;;  %v1545_v26 = vmul.f32 %v4304_v34, %v4429_v14 }
 0x2b9   : > { %v1046_v30 = vrot.slane %v4431_v17, 2  ;;  %v1058_v39 = vrot.slane %v1057_v23, 4  ;;  %v1050_v55 = vsel %vm979_vm1, %v4434_v19, -inf  ;;  %v3319_v41 = vpop.f32.mrb[28].mxu0  ;;  %3680 = vmatprep.subr.bf16.mxu1 %v3679_v20  ;;  %v1471_v43 = vmul.f32 %v4308_v35, %v4434_v19  ;;  %3646 = vmatpush3.bf16.msra.mxu0 %v3643_v16 }
 0x2ba   : > { %v1039_v44 = vrot.slane %v4438_v22, 2  ;;  %v1051_v45 = vrot.slane %v1050_v55, 4  ;;  %v4453_v46 = vadd.f32 %v3319_v41, %v4300_v33  ;;  %v960_v48 = vpop.f32.mrb[29].mxu0  ;;  %3682 = vmatpush3.bf16.msra.mxu1 %v3679_v20  ;;  %v3647_v51 = vpack.c.bf16 %v1543_v0, %v1542_v21 }
 0x2bb   : > { %v4455_v52 = vmax.f32 %v1057_v23, %v1058_v39  ;;  %v4458_v59 = vadd.f32 %v960_v48, %v4300_v33  ;;  %v3683_v60 = vpack.c.bf16 %v1472_v25, %v1471_v43  ;;  %v1544_v62 = vmul.f32 %v4304_v34, %v4434_v19 }
 0x2bc   : > { %v4462_v63 = vmax.f32 %v1050_v55, %v1051_v45  ;;  %v1071_v3 = vsel %vm979_vm1, %v4453_v46, -inf  ;;  %v1474_v4 = vmul.f32 %v4308_v35, %v4453_v46  ;;  %3648 = vmatprep.subr.bf16.mxu0 %v3647_v51  ;;  %v1547_v0 = vmul.f32 %v4304_v34, %v4453_v46 }
 0x2bd   : > { %v1072_v8 = vrot.slane %v1071_v3, 4  ;;  %v1064_v13 = vsel %vm979_vm1, %v4458_v59, -inf  ;;  %v3322_v15 = vpop.f32.mrb[30].mxu0  ;;  %3684 = vmatprep.subr.bf16.mxu1 %v3683_v60  ;;  %v1473_v16 = vmul.f32 %v4308_v35, %v4458_v59  ;;  %3650 = vmatpush3.bf16.msra.mxu0 %v3647_v51  ;;  %v3651_v39 = vpack.c.bf16 %v1545_v26, %v1544_v62 }
 0x2be   : > { %v1053_v20 = vrot.slane %v4462_v63, 2  ;;  %v1065_v21 = vrot.slane %v1064_v13, 4  ;;  %v4477_v23 = vadd.f32 %v3322_v15, %v4300_v33  ;;  %v970_v25 = vpop.f32.mrb[31].mxu0  ;;  %3686 = vmatpush3.bf16.msra.mxu1 %v3683_v60  ;;  %v1546_v45 = vmul.f32 %v4304_v34, %v4458_v59 }
 0x2bf   : > { %v4479_v55 = vmax.f32 %v1071_v3, %v1072_v8  ;;  %v4482_v41 = vadd.f32 %v970_v25, %v4300_v33  ;;  %v3687_v43 = vpack.c.bf16 %v1474_v4, %v1473_v16  ;;  %3652 = vmatprep.subr.bf16.mxu0 %v3651_v39  ;;  %v992_v26 = vrot.slane %v4381_v27, 1 }
 0x2c0   : > { %v4486_v48 = vmax.f32 %v1064_v13, %v1065_v21  ;;  %v1085_v51 = vsel %vm979_vm1, %v4477_v23, -inf  ;;  %v1476_v15 = vmul.f32 %v4308_v35, %v4477_v23  ;;  %v3655_v13 = vpack.c.bf16 %v1547_v0, %v1546_v45 }
 0x2c1   : > { %v1086_v62 = vrot.slane %v1085_v51, 4  ;;  %v1078_v33 = vsel %vm979_vm1, %v4482_v41, -inf  ;;  %3688 = vmatprep.subr.bf16.mxu1 %v3687_v43  ;;  %v1475_v3 = vmul.f32 %v4308_v35, %v4482_v41  ;;  %3654 = vmatpush3.bf16.msra.mxu0 %v3651_v39  ;;  %v993_v16 = vmax.f32 %v4381_v27, %v992_v26 }
 0x2c2   : > { %v1067_v4 = vrot.slane %v4486_v48, 2  ;;  %v1079_v8 = vrot.slane %v1078_v33, 4  ;;  %3690 = vmatpush3.bf16.msra.mxu1 %v3687_v43  ;;  %v1548_v31 = vmul.f32 %v4304_v34, %v4482_v41  ;;  %v1549_v60 = vmul.f32 %v4304_v34, %v4477_v23  ;;  %3656 = vmatprep.subr.bf16.mxu0 %v3655_v13 }
 0x2c3   : > { %v4500_v21 = vmax.f32 %v1085_v51, %v1086_v62  ;;  %v3691_v25 = vpack.c.bf16 %v1476_v15, %v1475_v3  ;;  %v1093_v35 = vsub.f32 %v4311_v37, %v993_v16  ;;  %v985_v39 = vrot.slane %v4388_v32, 1 }
 0x2c4   : > { %v4506_v5 = vmax.f32 %v1078_v33, %v1079_v8  ;;  %v996_v27 = vmax.f32 %v4348_v1, %v995_v6  ;;  %v3659_v43 = vpack.c.bf16 %v1549_v60, %v1548_v31  ;;  %v1005_v34 = vmax.f32 %v4360_v10, %v1004_v18 }
 0x2c5   : > { %v1088_v0 = vrot.slane %v4500_v21, 2  ;;  %3692 = vmatprep.subr.bf16.mxu1 %v3691_v25  ;;  %3658 = vmatpush3.bf16.msra.mxu0 %v3655_v13  ;;  %v1012_v45 = vmax.f32 %v4390_v36, %v1011_v47  ;;  %v1110_v15 = vmul.f32 1.442695, %v1093_v35  ;;  %v986_v26 = vmax.f32 %v4388_v32, %v985_v39 }
 0x2c6   : > { %v1081_v51 = vrot.slane %v4506_v5, 2  ;;  %3694 = vmatpush3.bf16.msra.mxu1 %v3691_v25  ;;  %v997_v1 = vrot.slane %v996_v27, 2  ;;  %3660 = vmatprep.subr.bf16.mxu0 %v3659_v43  ;;  %v1006_v6 = vrot.slane %v1005_v34, 1  ;;  %v1019_v10 = vmax.f32 %v4383_v28, %v1018_v42 }
 0x2c7   : > { %3696 = vmatprep.subr.bf16.mxu1 %v4358_v9  ;;  %v1013_v31 = vrot.slane %v1012_v45, 1  ;;  %v1026_v18 = vmax.f32 %v4414_v61, %v1025_v12  ;;  %3880 = vpow2.f32 %v1110_v15  ;;  %v1092_v36 = vsub.f32 %v4316_v40, %v986_v26 }
 0x2c8   : > { %v998_v47 = vmax.f32 %v996_v27, %v997_v1  ;;  %v1033_v32 = vmax.f32 %v4407_v57, %v1032_v2  ;;  %v1007_v60 = vmax.f32 %v1005_v34, %v1006_v6  ;;  %v1020_v33 = vrot.slane %v1019_v10, 1 }
 0x2c9   : > { %3662 = vmatpush3.bf16.msra.mxu0 %v3659_v43  ;;  %v1014_v62 = vmax.f32 %v1012_v45, %v1013_v31  ;;  %v1027_v3 = vrot.slane %v1026_v18, 1  ;;  %v1108_v8 = vmul.f32 1.442695, %v1092_v36  ;;  %v1040_v42 = vmax.f32 %v4438_v22, %v1039_v44 }
 0x2ca   : > { %v999_v13 = vrot.slane %v998_v47, 1  ;;  %v1034_v28 = vrot.slane %v1033_v32, 1  ;;  %v1095_v61 = vsub.f32 %v4331_v49, %v1007_v60  ;;  %v1021_v16 = vmax.f32 %v1019_v10, %v1020_v33 }
 0x2cb   : > { %v1096_v12 = vsub.f32 %v4363_v11, %v1014_v62  ;;  %v1028_v25 = vmax.f32 %v1026_v18, %v1027_v3  ;;  %3882 = vpow2.f32 %v1108_v8  ;;  %v1041_v35 = vrot.slane %v1040_v42, 1 }
 0x2cc   : > { %v1000_v57 = vmax.f32 %v998_v47, %v999_v13  ;;  %v1035_v2 = vmax.f32 %v1033_v32, %v1034_v28  ;;  %v1114_v39 = vmul.f32 1.442695, %v1095_v61  ;;  %v1097_v43 = vsub.f32 %v4356_v7, %v1021_v16 }
 0x2cd   : > { %v1116_v27 = vmul.f32 1.442695, %v1096_v12  ;;  %v1098_v34 = vsub.f32 %v4386_v29, %v1028_v25  ;;  %v1042_v44 = vmax.f32 %v1040_v42, %v1041_v35  ;;  %v1047_v15 = vmax.f32 %v4431_v17, %v1046_v30 }
 0x2ce   : > { %v1094_v45 = vsub.f32 %v4338_v56, %v1000_v57  ;;  %v1099_v22 = vsub.f32 %v4377_v24, %v1035_v2  ;;  %3884 = vpow2.f32 %v1114_v39  ;;  %v1118_v26 = vmul.f32 1.442695, %v1097_v43 }
 0x2cf   : > { %v1120_v1 = vmul.f32 1.442695, %v1098_v34  ;;  %v1054_v6 = vmax.f32 %v4462_v63, %v1053_v20  ;;  %3886 = vpow2.f32 %v1116_v27  ;;  %v1100_v18 = vsub.f32 %v4410_v58, %v1042_v44 }
 0x2d0   : > { %v1112_v31 = vmul.f32 1.442695, %v1094_v45  ;;  %v1122_v10 = vmul.f32 1.442695, %v1099_v22  ;;  %3888 = vpow2.f32 %v1118_v26  ;;  %v1048_v36 = vrot.slane %v1047_v15, 1 }
 0x2d1   : > { %v1055_v47 = vrot.slane %v1054_v6, 1  ;;  %v5239_v32 = vrot.slane %v4455_v52, 2  ;;  %v4552_v17 = vpop.eup %3880  ;;  %v1124_v30 = vmul.f32 1.442695, %v1100_v18  ;;  %v1068_v63 = vmax.f32 %v4486_v48, %v1067_v4 }
 0x2d2   : > { %3890 = vpow2.f32 %v1112_v31  ;;  %v5240_v20 = vrot.slane %v4479_v55, 2  ;;  %v1147_v33 = vsel %vm979_vm1, %v4552_v17, 0.0  ;;  %v1049_v3 = vmax.f32 %v1047_v15, %v1048_v36 }
 0x2d3   : > { %v1061_v60 = vmax.f32 %v4455_v52, %v5239_v32  ;;  %3892 = vpow2.f32 %v1120_v1  ;;  %v1056_v8 = vmax.f32 %v1054_v6, %v1055_v47  ;;  %v1148_v13 = vrot.slane %v1147_v33, 4 }
 0x2d4   : > { %v1075_v62 = vmax.f32 %v4479_v55, %v5240_v20  ;;  %3894 = vpow2.f32 %v1122_v10  ;;  %v1069_v28 = vrot.slane %v1068_v63, 1  ;;  %v1101_v42 = vsub.f32 %v4403_v50, %v1049_v3 }
 0x2d5   : > { %v1062_v52 = vrot.slane %v1061_v60, 1  ;;  %3896 = vpow2.f32 %v1124_v30  ;;  %v1102_v61 = vsub.f32 %v4434_v19, %v1056_v8  ;;  %v4564_v4 = vpop.eup %3882  ;;  %v1149_v12 = vadd.f32 %v1148_v13, %v1147_v33 }
 0x2d6   : > { %v1076_v48 = vrot.slane %v1075_v62, 1  ;;  %v4566_v16 = vmax.f32 %v1068_v63, %v1069_v28  ;;  %v4571_v25 = vmax.f32 %v4506_v5, %v1081_v51  ;;  %v1140_v57 = vsel %vm979_vm1, %v4564_v4, 0.0 }
 0x2d7   : > { %v1063_v55 = vmax.f32 %v1061_v60, %v1062_v52  ;;  %v1126_v2 = vmul.f32 1.442695, %v1101_v42  ;;  %v1128_v35 = vmul.f32 1.442695, %v1102_v61  ;;  %v1150_v27 = vrot.slane %v1149_v12, 2 }
 0x2d8   : > { %v4575_v39 = vmax.f32 %v1075_v62, %v1076_v48  ;;  %v1141_v43 = vrot.slane %v1140_v57, 4  ;;  %v4578_v45 = vpop.eup %3884  ;;  %v1104_v22 = vsub.f32 %v4458_v59, %v4566_v16  ;;  %v4592_v6 = vmax.f32 %v4500_v21, %v1088_v0 }
 0x2d9   : > { %v1103_v34 = vsub.f32 %v4429_v14, %v1063_v55  ;;  %3898 = vpow2.f32 %v1126_v2  ;;  %v4585_v44 = vpop.eup %3886  ;;  %v1151_v15 = vadd.f32 %v1150_v27, %v1149_v12  ;;  %v1161_v1 = vsel %vm979_vm1, %v4578_v45, 0.0 }
 0x2da   : > { %v1142_v26 = vadd.f32 %v1141_v43, %v1140_v57  ;;  %v4594_v31 = vpop.eup %3888  ;;  %v1162_v10 = vrot.slane %v1161_v1, 4  ;;  %v1168_v18 = vsel %vm979_vm1, %v4585_v44, 0.0  ;;  %3900 = vpow2.f32 %v1128_v35 }
 0x2db   : > { %v1130_v36 = vmul.f32 1.442695, %v1103_v34  ;;  %v1152_v32 = vrot.slane %v1151_v15, 1  ;;  %v1169_v30 = vrot.slane %v1168_v18, 4  ;;  %v1175_v63 = vsel %vm979_vm1, %v4594_v31, 0.0 }
 0x2dc   : > { %v4598_v47 = vpop.eup %3890  ;;  %v1143_v60 = vrot.slane %v1142_v26, 2  ;;  %v1163_v0 = vadd.f32 %v1162_v10, %v1161_v1  ;;  %v1176_v62 = vrot.slane %v1175_v63, 4 }
 0x2dd   : > { %v4602_v20 = vpop.eup %3892  ;;  %v1154_v21 = vsel %vm979_vm1, %v4598_v47, 0.0  ;;  %3902 = vpow2.f32 %v1130_v36  ;;  %v1153_v3 = vadd.f32 %v1152_v32, %v1151_v15  ;;  %v1170_v52 = vadd.f32 %v1169_v30, %v1168_v18 }
 0x2de   : > { %v4606_v33 = vpop.eup %3894  ;;  %v1144_v8 = vadd.f32 %v1143_v60, %v1142_v26  ;;  %v1155_v13 = vrot.slane %v1154_v21, 4  ;;  %v1164_v42 = vrot.slane %v1163_v0, 2  ;;  %v1177_v61 = vadd.f32 %v1176_v62, %v1175_v63 }
 0x2df   : > { %v4608_v28 = vpop.eup %3896  ;;  %v1182_v48 = vsel %vm979_vm1, %v4602_v20, 0.0  ;;  %v1189_v12 = vsel %vm979_vm1, %v4606_v33, 0.0  ;;  %3904 = vrcp.f32 %v1153_v3  ;;  %v1171_v2 = vrot.slane %v1170_v52, 2 }
 0x2e0   : > { %v1145_v55 = vrot.slane %v1144_v8, 1  ;;  %v1156_v57 = vadd.f32 %v1155_v13, %v1154_v21  ;;  %v1165_v35 = vadd.f32 %v1164_v42, %v1163_v0  ;;  %v1178_v27 = vrot.slane %v1177_v61, 2 }
 0x2e1   : > { %v1183_v43 = vrot.slane %v1182_v48, 4  ;;  %v1190_v34 = vrot.slane %v1189_v12, 4  ;;  %v1172_v1 = vadd.f32 %v1171_v2, %v1170_v52  ;;  %v1196_v10 = vsel %vm979_vm1, %v4608_v28, 0.0 }
 0x2e2   : > { %v1146_v15 = vadd.f32 %v1145_v55, %v1144_v8  ;;  %v1157_v26 = vrot.slane %v1156_v57, 2  ;;  %v1166_v36 = vrot.slane %v1165_v35, 1  ;;  %v1179_v32 = vadd.f32 %v1178_v27, %v1177_v61 }
 0x2e3   : > { %v4616_v18 = vpop.eup %3898  ;;  %v1184_v60 = vadd.f32 %v1183_v43, %v1182_v48  ;;  %v1191_v30 = vadd.f32 %v1190_v34, %v1189_v12  ;;  %v1173_v21 = vrot.slane %v1172_v1, 1  ;;  %v1197_v62 = vrot.slane %v1196_v10, 4 }
 0x2e4   : > { %3906 = vrcp.f32 %v1146_v15  ;;  %v1158_v63 = vadd.f32 %v1157_v26, %v1156_v57  ;;  %v4618_v0 = vpop.eup %3900  ;;  %v1167_v3 = vadd.f32 %v1166_v36, %v1165_v35  ;;  %v1180_v13 = vrot.slane %v1179_v32, 1 }
 0x2e5   : > { %v1185_v8 = vrot.slane %v1184_v60, 2  ;;  %v1192_v42 = vrot.slane %v1191_v30, 2  ;;  %v1174_v55 = vadd.f32 %v1173_v21, %v1172_v1  ;;  %v1198_v2 = vadd.f32 %v1197_v62, %v1196_v10 }
 0x2e6   : > { %v1159_v52 = vrot.slane %v1158_v63, 1  ;;  %v1203_v51 = vsel %vm979_vm1, %v4616_v18, 0.0  ;;  %v1181_v61 = vadd.f32 %v1180_v13, %v1179_v32  ;;  %v1132_v57 = vmul.f32 1.442695, %v1104_v22 }
 0x2e7   : > { %v4622_v5 = vpop.eup %3902  ;;  %v1186_v48 = vadd.f32 %v1185_v8, %v1184_v60  ;;  %v1193_v12 = vadd.f32 %v1192_v42, %v1191_v30  ;;  %3908 = vrcp.f32 %v1174_v55  ;;  %v1199_v35 = vrot.slane %v1198_v2, 2 }
 0x2e8   : > { %v1160_v27 = vadd.f32 %v1159_v52, %v1158_v63  ;;  %v1204_v43 = vrot.slane %v1203_v51, 4  ;;  %3910 = vrcp.f32 %v1167_v3  ;;  %v1210_v26 = vsel %vm979_vm1, %v4618_v0, 0.0 }
 0x2e9   : > { %v1187_v34 = vrot.slane %v1186_v48, 1  ;;  %v1194_v15 = vrot.slane %v1193_v12, 1  ;;  %v3905_v1 = vpop.eup %3904  ;;  %v1200_v10 = vadd.f32 %v1199_v35, %v1198_v2  ;;  %v1211_v32 = vrot.slane %v1210_v26, 4 }
 0x2ea   : > { %3912 = vrcp.f32 %v1160_v27  ;;  %v1205_v36 = vadd.f32 %v1204_v43, %v1203_v51  ;;  %v1285_v60 = vmul.f32 %v3905_v1, %v4552_v17  ;;  %v1217_v22 = vsel %vm979_vm1, %v4622_v5, 0.0 }
 0x2eb   : > { %3914 = vrcp.f32 %v1181_v61  ;;  %v1188_v16 = vadd.f32 %v1187_v34, %v1186_v48  ;;  %v1201_v30 = vrot.slane %v1200_v10, 1  ;;  %v1212_v21 = vadd.f32 %v1211_v32, %v1210_v26 }
 0x2ec   : > { %v1206_v63 = vrot.slane %v1205_v36, 2  ;;  %v1218_v62 = vrot.slane %v1217_v22, 4  ;;  %1318 = vrot.lane.b32.xlu0 %v1285_v60, %s4042_s30  ;;  %v5241_v3 = vsub.f32 %v4453_v46, %v4575_v39  ;;  %v5242_v13 = vrot.slane %v4571_v25, 1 }
 0x2ed   : > { %3916 = vrcp.f32 %v1188_v16  ;;  %v1090_v8 = vrot.slane %v4592_v6, 1  ;;  %v1195_v52 = vadd.f32 %v1194_v15, %v1193_v12  ;;  %v1202_v55 = vadd.f32 %v1201_v30, %v1200_v10 }
 0x2ee   : > { %v1134_v51 = vmul.f32 1.442695, %v5241_v3  ;;  %v1084_v17 = vmax.f32 %v4571_v25, %v5242_v13  ;;  %v3907_v42 = vpop.eup %3906  ;;  %v1207_v2 = vadd.f32 %v1206_v63, %v1205_v36  ;;  %v1213_v61 = vrot.slane %v1212_v21, 2 }
 0x2ef   : > { %v1284_v48 = vmul.f32 %v3907_v42, %v4564_v4  ;;  %v1219_v27 = vadd.f32 %v1218_v62, %v1217_v22  ;;  %3918 = vpow2.f32 %v1132_v57  ;;  %v1091_v34 = vmax.f32 %v4592_v6, %v1090_v8 }
 0x2f0   : > { %v1106_v35 = vsub.f32 %v4482_v41, %v1084_v17  ;;  %3920 = vrcp.f32 %v1202_v55  ;;  %v1208_v39 = vrot.slane %v1207_v2, 1  ;;  %v1214_v43 = vadd.f32 %v1213_v61, %v1212_v21 }
 0x2f1   : > { %1316 = vrot.lane.b32.xlu0 %v1284_v48, %s4042_s30  ;;  %v1220_v25 = vrot.slane %v1219_v27, 2  ;;  %3922 = vpow2.f32 %v1134_v51  ;;  %v3909_v12 = vpop.eup %3908  ;;  %v1107_v4 = vsub.f32 %v4477_v23, %v1091_v34 }
 0x2f2   : > { %v1136_v26 = vmul.f32 1.442695, %v1106_v35  ;;  %3924 = vrcp.f32 %v1195_v52  ;;  %v1209_v15 = vadd.f32 %v1208_v39, %v1207_v2  ;;  %v1215_v1 = vrot.slane %v1214_v43, 1  ;;  %v3911_v10 = vpop.eup %3910 }
 0x2f3   : > { %v1288_v57 = vmul.f32 %v3909_v12, %v4585_v44  ;;  %v1221_v36 = vadd.f32 %v1220_v25, %v1219_v27  ;;  %v1138_v16 = vmul.f32 1.442695, %v1107_v4  ;;  %v1287_v3 = vmul.f32 %v3911_v10, %v4578_v45 }
 0x2f4   : > { %3926 = vpow2.f32 %v1136_v26  ;;  %v3913_v32 = vpop.eup %3912  ;;  %v1216_v60 = vadd.f32 %v1215_v1, %v1214_v43 }
 0x2f5   : > { %v3915_v6 = vpop.eup %3914  ;;  %v1286_v22 = vmul.f32 %v3913_v32, %v4598_v47  ;;  %1324 = vrot.lane.b32.xlu0 %v1288_v57, %s4042_s30  ;;  %3928 = vrcp.f32 %v1209_v15  ;;  %v1222_v30 = vrot.slane %v1221_v36, 1 }
 0x2f6   : > { %3930 = vrcp.f32 %v1216_v60  ;;  %v1289_v55 = vmul.f32 %v3915_v6, %v4594_v31 }
 0x2f7   : > { %v3917_v63 = vpop.eup %3916  ;;  %1320 = vrot.lane.b32.xlu1 %v1286_v22, %s4042_s30  ;;  %3932 = vpow2.f32 %v1138_v16  ;;  %v1223_v44 = vadd.f32 %v1222_v30, %v1221_v36 }
 0x2f8   : > { %v1290_v21 = vmul.f32 %v3917_v63, %v4602_v20 }
 0x2f9   : > { %v3919_v62 = vpop.eup %3918  ;;  %3934 = vrcp.f32 %v1223_v44 }
 0x2fa   : > { %v3921_v51 = vpop.eup %3920  ;;  %1328 = vrot.lane.b32.xlu0 %v1290_v21, %s4042_s30  ;;  %v1224_v47 = vsel %vm979_vm1, %v3919_v62, 0.0 }
 0x2fb   : > { %v3923_v13 = vpop.eup %3922  ;;  %1322 = vrot.lane.b32.xlu1 %v1287_v3, %s4042_s30  ;;  %v1292_v17 = vmul.f32 %v3921_v51, %v4608_v28  ;;  %v1225_v8 = vrot.slane %v1224_v47, 4 }
 0x2fc   : > { %v3925_v42 = vpop.eup %3924  ;;  %v1231_v52 = vsel %vm979_vm1, %v3923_v13, 0.0 }
 0x2fd   : > { %v1226_v2 = vadd.f32 %v1225_v8, %v1224_v47  ;;  %v1232_v45 = vrot.slane %v1231_v52, 4  ;;  %v1291_v43 = vmul.f32 %v3925_v42, %v4606_v33 }
 0x2fe   : > { %v3927_v20 = vpop.eup %3926  ;;  %1332 = vrot.lane.b32.xlu0 %v1292_v17, %s4042_s30 }
 0x2ff   : > { %v1238_v61 = vsel %vm979_vm1, %v3927_v20, 0.0  ;;  %v3929_v48 = vpop.eup %3928  ;;  %1326 = vrot.lane.b32.xlu1 %v1289_v55, %s4042_s30  ;;  %v1227_v27 = vrot.slane %v1226_v2, 2  ;;  %v1233_v35 = vadd.f32 %v1232_v45, %v1231_v52 }
 0x300   : > { %v1239_v28 = vrot.slane %v1238_v61, 4  ;;  %v3931_v39 = vpop.eup %3930  ;;  %v1293_v36 = vmul.f32 %v3929_v48, %v4616_v18 }
 0x301   : > { %v3933_v34 = vpop.eup %3932  ;;  %v1294_v25 = vmul.f32 %v3931_v39, %v4618_v0  ;;  %v1228_v26 = vadd.f32 %v1227_v27, %v1226_v2  ;;  %v1234_v31 = vrot.slane %v1233_v35, 2 }
 0x302   : > { %v1240_v12 = vadd.f32 %v1239_v28, %v1238_v61  ;;  %v1245_v15 = vsel %vm979_vm1, %v3933_v34, 0.0 }
 0x303   : > { %1330 = vrot.lane.b32.xlu1 %v1291_v43, %s4042_s30  ;;  %1336 = vrot.lane.b32.xlu0 %v1294_v25, %s4042_s30  ;;  %v1229_v1 = vrot.slane %v1228_v26, 1  ;;  %v1235_v4 = vadd.f32 %v1234_v31, %v1233_v35  ;;  %v1246_v57 = vrot.slane %v1245_v15, 4  ;;  %v3935_v0 = vpop.eup %3934 }
 0x304   : > { %v1241_v10 = vrot.slane %v1240_v12, 2  ;;  %v1295_v63 = vmul.f32 %v3935_v0, %v4622_v5  ;;  %v4687_v0 = vld [vmem:[%s5234_s9] sm:$0xff] }
 0x305   : > { %v1230_v32 = vadd.f32 %v1229_v1, %v1228_v26  ;;  %v1236_v33 = vrot.slane %v1235_v4, 1  ;;  %v1247_v16 = vadd.f32 %v1246_v57, %v1245_v15 }
 0x306   : > { %v1242_v60 = vadd.f32 %v1241_v10, %v1240_v12  ;;  %v4043_v12 = vmov 1966171168  }
 0x307   : > { %1334 = vrot.lane.b32.xlu1 %v1293_v36, %s4042_s30  ;;  %3936 = vrcp.f32 %v1230_v32  ;;  %v1237_v6 = vadd.f32 %v1236_v33, %v1235_v4  ;;  %v1248_v30 = vrot.slane %v1247_v16, 2  ;;  %v1406_v15 = vunpack.c.l.s4 %v4043_v12 }
 0x308   : > { %v1243_v22 = vrot.slane %v1242_v60, 1 }
 0x309   : > { %3938 = vrcp.f32 %v1237_v6  ;;  %v1249_v44 = vadd.f32 %v1248_v30, %v1247_v16  ;;  %v1407_v1 = vunpack.c.0.s8 %v1406_v15  ;;  %v4682_v16 = vld [vmem:[%s5234_s9 + $0x8] sm:$0xff] }
 0x30a   : > { %v1244_v21 = vadd.f32 %v1243_v22, %v1242_v60  ;;  %v4736_v15 = vld [vmem:[%s5234_s9 + $0x28] sm:$0xff] }
 0x30b   : > { %1338 = vrot.lane.b32.xlu1 %v1295_v63, %s4042_s30  ;;  %v1250_v18 = vrot.slane %v1249_v44, 1  ;;  %v4674_v4 = vsub.s32 %v1407_v1, %v4262_v53  ;;  %v1823_v1 = vmul.f32 %v4313_v38, %v4386_v29 }
 0x30c   : > { %3940 = vrcp.f32 %v1244_v21 }
 0x30d   : > { %v1251_v3 = vadd.f32 %v1250_v18, %v1249_v44  ;;  %v1819_v44 = vmul.f32 %v4313_v38, %v4338_v56 }
 0x30f   : > { %3942 = vrcp.f32 %v1251_v3 }
 0x311   : > { %v3937_v51 = vpop.eup %3936 }
 0x312   : > { %v1296_v47 = vmul.f32 %v3937_v51, %v3919_v62 }
 0x313   : > { %v3939_v17 = vpop.eup %3938 }
 0x314   : > { %1340 = vrot.lane.b32.xlu0 %v1296_v47, %s4042_s30  ;;  %v1297_v8 = vmul.f32 %v3939_v17, %v3923_v13  ;;  %v4700_v47 = vld [vmem:[%s5234_s9 + $0x10] sm:$0xff]  ;;  %v1820_v17 = vmul.f32 %v4313_v38, %v4331_v49 }
 0x316   : > { %v3941_v42 = vpop.eup %3940  ;;  %1342 = vrot.lane.b32.xlu1 %v1297_v8, %s4042_s30 }
 0x317   : > { %v1298_v52 = vmul.f32 %v3941_v42, %v3927_v20 }
 0x319   : > { %1344 = vrot.lane.b32.xlu0 %v1298_v52, %s4042_s30  ;;  %v3943_v5 = vpop.eup %3942 }
 0x31a   : > { %v1299_v55 = vmul.f32 %v3943_v5, %v3933_v34 }
 0x31c   : > { %1346 = vrot.lane.b32.xlu1 %v1299_v55, %s4042_s30  ;;  %v1821_v55 = vmul.f32 %v4313_v38, %v4363_v11 }
 0x35e   : > { %v1319_v2 = vpop.permute.xlu0 %1318 }
 0x363   : > { %v1317_v45 = vpop.permute.xlu0 %1316 }
 0x364   : > { %1364 = vxpose.xlu0.b32.start [1/16] (narrow) %v1317_v45, 16 }
 0x367   : > { %v1325_v48 = vpop.permute.xlu0 %1324 }
 0x368   : > { %1365 = vxpose.xlu0.b32.cont [2/16] (narrow) %v1319_v2, 16 }
 0x369   : > { %v1321_v61 = vpop.permute.xlu1 %1320 }
 0x36c   : > { %1366 = vxpose.xlu0.b32.cont [3/16] (narrow) %v1321_v61, 16  ;;  %v1329_v27 = vpop.permute.xlu0 %1328  ;;  %v4712_v61 = vld [vmem:[%s5234_s9 + $0x18] sm:$0xff] }
 0x36d   : > { %v1323_v62 = vpop.permute.xlu1 %1322 }
 0x370   : > { %1367 = vxpose.xlu0.b32.cont [4/16] (narrow) %v1323_v62, 16  ;;  %v1333_v35 = vpop.permute.xlu0 %1332 }
 0x371   : > { %v1327_v13 = vpop.permute.xlu1 %1326 }
 0x374   : > { %1368 = vxpose.xlu0.b32.cont [5/16] (narrow) %v1325_v48, 16  ;;  %v1822_v48 = vmul.f32 %v4313_v38, %v4356_v7 }
 0x375   : > { %v1331_v20 = vpop.permute.xlu1 %1330  ;;  %v1337_v39 = vpop.permute.xlu0 %1336 }
 0x378   : > { %1369 = vxpose.xlu0.b32.cont [6/16] (narrow) %v1327_v13, 16 }
 0x379   : > { %v1335_v28 = vpop.permute.xlu1 %1334 }
 0x37c   : > { %1370 = vxpose.xlu0.b32.cont [7/16] (narrow) %v1329_v27, 16 }
 0x37d   : > { %v1339_v43 = vpop.permute.xlu1 %1338 }
 0x380   : > { %1371 = vxpose.xlu0.b32.cont [8/16] (narrow) %v1331_v20, 16 }
 0x384   : > { %1372 = vxpose.xlu0.b32.cont [9/16] (narrow) %v1333_v35, 16  ;;  %v4723_v35 = vld [vmem:[%s5234_s9 + $0x20] sm:$0xff] }
 0x386   : > { %v1341_v34 = vpop.permute.xlu0 %1340 }
 0x388   : > { %1373 = vxpose.xlu0.b32.cont [10/16] (narrow) %v1335_v28, 16  ;;  %v1343_v25 = vpop.permute.xlu1 %1342 }
 0x38b   : > { %v1345_v26 = vpop.permute.xlu0 %1344 }
 0x38c   : > { %1374 = vxpose.xlu0.b32.cont [11/16] (narrow) %v1337_v39, 16  ;;  %v3699_v39 = vpack.c.bf16 %v1820_v17, %v1819_v44  ;;  %v4765_v44 = vld [vmem:[%s5234_s9 + $0x38] sm:$0xff]  ;;  %v1826_v17 = vmul.f32 %v4313_v38, %v4403_v50 }
 0x38e   : > { %v1347_v31 = vpop.permute.xlu1 %1346 }
 0x390   : > { %1375 = vxpose.xlu0.b32.cont [12/16] (narrow) %v1339_v43, 16 }
 0x394   : > { %1376 = vxpose.xlu0.b32.cont [13/16] (narrow) %v1341_v34, 16 }
 0x398   : > { %1377 = vxpose.xlu0.b32.cont [14/16] (narrow) %v1343_v25, 16 }
 0x39c   : > { %1378 = vxpose.xlu0.b32.cont [15/16] (narrow) %v1345_v26, 16 }
 0x3a0   : > { %1379 = vxpose.xlu0.b32.end [16/16] (narrow) %v1347_v31, 16 }
 0x3e4   : > { %v1380_v10 = vpop.trf.xlu0 }
 0x3e5   : > { %v1411_v57 = vrot.slane %v1380_v10, %v4674_v4  ;;  %v1477_v36 = vcombine.high %v1380_v10, %v1380_v10  ;;  %v3703_v10 = vpack.c.bf16 %v1822_v48, %v1821_v55  ;;  %v1827_v48 = vmul.f32 %v4313_v38, %v4434_v19 }
 0x3e7   : > { %v1412_v32 = vcombine.high %v1411_v57, %v1411_v57  ;;  %v1419_v33 = vrot.slane %v1411_v57, %v4674_v4  ;;  %v1484_v60 = vrot.slane %v1477_v36, %v4674_v4  ;;  %v4744_v57 = vld [vmem:[%s5234_s9 + $0x30] sm:$0xff]  ;;  %v1824_v36 = vmul.f32 %v4313_v38, %v4377_v24 }
 0x3e8   : > { %v1381_v8 = vpop.trf.xlu0 }
 0x3e9   : > { %v1426_v6 = vrot.slane %v1412_v32, %v4674_v4  ;;  %v1427_v22 = vcombine.high %v1419_v33, %v1419_v33  ;;  %v1432_v30 = vrot.slane %v1419_v33, %v4265_v54  ;;  %v1485_v63 = vcombine.high %v1484_v60, %v1484_v60 }
 0x3ea   : > { %v1492_v21 = vrot.slane %v1484_v60, %v4674_v4  ;;  %v4726_v28 = vrot.slane %v1381_v8, %v4674_v4  ;;  %v1946_v34 = vcombine.high %v1381_v8, %v1381_v8 }
 0x3eb   : > { %v1450_v18 = vmul.f32 %v1432_v30, %v4682_v16  ;;  %v1499_v3 = vrot.slane %v1485_v63, %v4674_v4  ;;  %v1449_v51 = vmul.f32 %v1432_v30, %v4687_v0  ;;  %v1436_v5 = vrot.slane %v1426_v6, %v4265_v54 }
 0x3ec   : > { %v1500_v42 = vcombine.high %v1492_v21, %v1492_v21  ;;  %v1505_v52 = vrot.slane %v1492_v21, %v4265_v54  ;;  %v1428_v2 = vcombine.high %v1426_v6, %v1426_v6  ;;  %v1440_v62 = vrot.slane %v1427_v22, %v4265_v54 }
 0x3ed   : > { %3399 = vmatprep.mubr.f32.mxu1 %v1449_v51  ;;  %v1509_v45 = vrot.slane %v1499_v3, %v4265_v54  ;;  %v1451_v20 = vmul.f32 %v1436_v5, %v4700_v47  ;;  %v1452_v25 = vmul.f32 %v1436_v5, %v4712_v61  ;;  %v1501_v31 = vcombine.high %v1499_v3, %v1499_v3 }
 0x3ee   : > { %3400 = vmatmul.mubr.f32.vlgmr.msra.gmra.mrb[16].mxu1 %v1450_v18  ;;  %v1522_v13 = vmul.f32 %v1505_v52, %v4687_v0  ;;  %v1523_v27 = vmul.f32 %v1505_v52, %v4682_v16  ;;  %v1513_v26 = vrot.slane %v1500_v42, %v4265_v54  ;;  %v1453_v12 = vmul.f32 %v1440_v62, %v4723_v35 }
 0x3ef   : > { %3698 = vmatpush3.bf16.msra.mxu1 %v4358_v9  ;;  %v1524_v43 = vmul.f32 %v1509_v45, %v4700_v47  ;;  %3402 = vmatprep.mubr.f32.mxu1 %v1451_v20  ;;  %v1444_v9 = vrot.slane %v1428_v2, %v4265_v54  ;;  %v4750_v32 = vrot.slane %v4726_v28, %v4674_v4 }
 0x3f0   : > { %3355 = vmatprep.mubr.f32.mxu0 %v1522_v13  ;;  %3700 = vmatprep.subr.bf16.mxu1 %v3699_v39  ;;  %v1525_v33 = vmul.f32 %v1509_v45, %v4712_v61  ;;  %v4754_v60 = vrot.slane %v1946_v34, %v4674_v4  ;;  %v1526_v6 = vmul.f32 %v1513_v26, %v4723_v35  ;;  %v2001_v34 = vsub.s32 4, %v4262_v53 }
 0x3f1   : > { %3356 = vmatmul.mubr.f32.vlgmr.msra.gmra.mrb[32].mxu0 %v1523_v27  ;;  %v1454_v22 = vmul.f32 %v1440_v62, %v4736_v15  ;;  %v1517_v30 = vrot.slane %v1501_v31, %v4265_v54  ;;  %v1788_v63 = vrot.slane %v4750_v32, %v4265_v54  ;;  %v1455_v21 = vmul.f32 %v1444_v9, %v4744_v57 }
 0x3f2   : > { %3358 = vmatprep.mubr.f32.mxu0 %v1524_v43  ;;  %3403 = vmatmul.mubr.f32.gmra.mrb[18].mxu1 %v1452_v25  ;;  %v1954_v18 = vcombine.high %v4754_v60, %v4754_v60  ;;  %v3707_v3 = vpack.c.bf16 %v1824_v36, %v1823_v1  ;;  %v1825_v51 = vmul.f32 %v4313_v38, %v4410_v58 }
 0x3f3   : > { %3702 = vmatpush3.bf16.msra.mxu1 %v3699_v39  ;;  %3405 = vmatprep.mubr.f32.mxu1 %v1453_v12  ;;  %v1527_v8 = vmul.f32 %v1513_v26, %v4736_v15  ;;  %v1805_v52 = vmul.f32 %v1788_v63, %v4687_v0  ;;  %v1528_v5 = vmul.f32 %v1517_v30, %v4744_v57 }
 0x3f4   : > { %3704 = vmatprep.subr.bf16.mxu1 %v3703_v10  ;;  %v1968_v42 = vrot.slane %v1954_v18, %v4674_v4  ;;  %v1456_v55 = vmul.f32 %v1444_v9, %v4765_v44  ;;  %v3711_v62 = vpack.c.bf16 %v1826_v17, %v1825_v51  ;;  %v1828_v13 = vmul.f32 %v4313_v38, %v4429_v14 }
 0x3f5   : > { %3359 = vmatmul.mubr.f32.gmra.mrb[34].mxu0 %v1525_v33  ;;  %v1529_v27 = vmul.f32 %v1517_v30, %v4765_v44  ;;  %v1829_v43 = vmul.f32 %v4313_v38, %v4458_v59  ;;  %v1830_v26 = vmul.f32 %v4313_v38, %v4453_v46  ;;  %v1768_v9 = vcombine.high %v4726_v28, %v4726_v28  ;;  %v4811_v33 = vld [vmem:[%s5233_s8 + $0x8] sm:$0xff] }
 0x3f6   : > { %3361 = vmatprep.mubr.f32.mxu0 %v1526_v6  ;;  %3406 = vmatmul.mubr.f32.gmra.mrb[20].mxu1 %v1454_v22  ;;  %v4779_v2 = vrot.slane %v1968_v42, %v4265_v54  ;;  %v1970_v45 = vcombine.high %v1968_v42, %v1968_v42  ;;  %v3715_v25 = vpack.c.bf16 %v1828_v13, %v1827_v48 }
 0x3f7   : > { %3706 = vmatpush3.bf16.msra.mxu1 %v3703_v10  ;;  %3408 = vmatprep.mubr.f32.mxu1 %v1455_v21  ;;  %v3719_v1 = vpack.c.bf16 %v1830_v26, %v1829_v43  ;;  %v1831_v10 = vmul.f32 %v4313_v38, %v4482_v41  ;;  %v1832_v36 = vmul.f32 %v4313_v38, %v4477_v23 }
 0x3f8   : > { %3708 = vmatprep.subr.bf16.mxu1 %v3707_v3  ;;  %v4788_v20 = vmul.f32 %v4779_v2, %v4712_v61  ;;  %v1986_v39 = vrot.slane %v1970_v45, %v4265_v54  ;;  %v4816_v6 = vrot.slane %v4811_v33, %v2001_v34  ;;  %v1782_v28 = vrot.slane %v1768_v9, %v4674_v4 }
 0x3f9   : > { %3362 = vmatmul.mubr.f32.gmra.mrb[36].mxu0 %v1527_v8  ;;  %v3723_v22 = vpack.c.bf16 %v1832_v36, %v1831_v10  ;;  %v1783_v18 = vcombine.high %v4750_v32, %v4750_v32 }
 0x3fa   : > { %3364 = vmatprep.mubr.f32.mxu0 %v1528_v5  ;;  %3409 = vmatmul.mubr.f32.gmra.mrb[22].mxu1 %v1456_v55  ;;  %v4797_v31 = vmul.f32 %v1986_v39, %v4744_v57  ;;  %v4800_v12 = vmul.f32 %v1986_v39, %v4765_v44  ;;  %v2003_v30 = vmul.f32 %v4816_v6, %v4316_v40 }
 0x3fb   : > { %3710 = vmatpush3.bf16.msra.mxu1 %v3707_v3  ;;  %3443 = vmatprep.mubr.f32.mxu1 %v1805_v52  ;;  %v2004_v38 = vmul.f32 %v4816_v6, %v4311_v37  ;;  %v1792_v21 = vrot.slane %v1782_v28, %v4265_v54  ;;  %v1806_v3 = vmul.f32 %v1788_v63, %v4682_v16 }
 0x3fc   : > { %3712 = vmatprep.subr.bf16.mxu1 %v3711_v62  ;;  %v2005_v17 = vmul.f32 %v4816_v6, %v4338_v56  ;;  %v2006_v8 = vmul.f32 %v4816_v6, %v4331_v49  ;;  %v1784_v37 = vcombine.high %v1782_v28, %v1782_v28  ;;  %v1796_v42 = vrot.slane %v1783_v18, %v4265_v54 }
 0x3fd   : > { %3365 = vmatmul.mubr.f32.gmra.mrb[38].mxu0 %v1529_v27  ;;  %v3727_v51 = vpack.c.bf16 %v2004_v38, %v2003_v30  ;;  %v1807_v40 = vmul.f32 %v1792_v21, %v4700_v47  ;;  %v2007_v32 = vmul.f32 %v4816_v6, %v4363_v11  ;;  %v2008_v63 = vmul.f32 %v4816_v6, %v4356_v7 }
 0x3fe   : > { %v3731_v52 = vpack.c.bf16 %v2006_v8, %v2005_v17  ;;  %v1808_v49 = vmul.f32 %v1792_v21, %v4712_v61  ;;  %v1961_v56 = vrot.slane %v4754_v60, %v4674_v4  ;;  %v1809_v5 = vmul.f32 %v1796_v42, %v4723_v35 }
 0x3ff   : > { %3714 = vmatpush3.bf16.msra.mxu1 %v3711_v62  ;;  %v1800_v55 = vrot.slane %v1784_v37, %v4265_v54  ;;  %v3735_v45 = vpack.c.bf16 %v2008_v63, %v2007_v32  ;;  %v2009_v11 = vmul.f32 %v4816_v6, %v4386_v29  ;;  %v2010_v7 = vmul.f32 %v4816_v6, %v4377_v24 }
 0x400   : > { %3716 = vmatprep.subr.bf16.mxu1 %v3715_v25  ;;  %v1810_v61 = vmul.f32 %v1796_v42, %v4736_v15  ;;  %v1974_v4 = vrot.slane %v1961_v56, %v4265_v54  ;;  %v2011_v48 = vmul.f32 %v4816_v6, %v4410_v58  ;;  %v2012_v29 = vmul.f32 %v4816_v6, %v4403_v50 }
 0x401   : > { %v1811_v62 = vmul.f32 %v1800_v55, %v4744_v57  ;;  %v3739_v60 = vpack.c.bf16 %v2010_v7, %v2009_v11  ;;  %v1812_v24 = vmul.f32 %v1800_v55, %v4765_v44  ;;  %v2013_v57 = vmul.f32 %v4816_v6, %v4434_v19  ;;  %v2136_v55 = vld [vmem:[%s5232_s7] sm:$0xff] }
 0x402   : > { %v1991_v13 = vmul.f32 %v1974_v4, %v4687_v0  ;;  %v3743_v27 = vpack.c.bf16 %v2012_v29, %v2011_v48  ;;  %v2014_v39 = vmul.f32 %v4816_v6, %v4429_v14  ;;  %v2015_v50 = vmul.f32 %v4816_v6, %v4458_v59 }
 0x403   : > { %3718 = vmatpush3.bf16.msra.mxu1 %v3715_v25  ;;  %v2016_v44 = vmul.f32 %v4816_v6, %v4453_v46  ;;  %v2017_v43 = vmul.f32 %v4816_v6, %v4482_v41  ;;  %v2018_v19 = vmul.f32 %v4816_v6, %v4477_v23  ;;  %v1969_v25 = vcombine.high %v1961_v56, %v1961_v56  ;;  %v2137_v56 = vld [vmem:[%s5232_s7 + $0x8] sm:$0xff] }
 0x404   : > { %3720 = vmatprep.subr.bf16.mxu1 %v3719_v1  ;;  %v3747_v58 = vpack.c.bf16 %v2014_v39, %v2013_v57  ;;  %v1992_v59 = vmul.f32 %v1974_v4, %v4682_v16  ;;  %v1993_v46 = vmul.f32 %v4779_v2, %v4700_v47  ;;  %v2132_v16 = vld [vmem:[%s5229_s4] sm:$0xff]  ;;  %v2133_v47 = vld [vmem:[%s5229_s4 + $0x8] sm:$0xff] }
 0x405   : > { %v3751_v0 = vpack.c.bf16 %v2016_v44, %v2015_v50  ;;  %v3755_v14 = vpack.c.bf16 %v2018_v19, %v2017_v43  ;;  %v1982_v26 = vrot.slane %v1969_v25, %v4265_v54  ;;  %v3759_v2 = vpack.c.bf16 %v2133_v47, %v2132_v16  ;;  %v2140_v19 = vld [vmem:[%s5232_s7 + $0x20] sm:$0xff] }
 0x407   : > { %3722 = vmatpush3.bf16.msra.mxu1 %v3719_v1  ;;  %v1995_v41 = vmul.f32 %v1982_v26, %v4723_v35  ;;  %v1996_v23 = vmul.f32 %v1982_v26, %v4736_v15  ;;  %v2134_v35 = vld [vmem:[%s5229_s4 + $0x10] sm:$0xff]  ;;  %v2135_v15 = vld [vmem:[%s5229_s4 + $0x18] sm:$0xff]  ;;  %3760 = vmatprep.subr.bf16.mxu0 %v3759_v2 }
 0x408   : > { %3724 = vmatprep.subr.bf16.mxu1 %v3723_v22  ;;  %3762 = vmatpush3.bf16.msra.mxu0 %v3759_v2 }
 0x40b   : > { %3726 = vmatpush3.bf16.msra.mxu1 %v3723_v22 }
 0x40c   : > { %3728 = vmatprep.subr.bf16.mxu1 %v3727_v51 }
 0x40e   : > { %3444 = vmatmul.mubr.f32.vlgmr.msra.gmra.mrb[16].mxu1 %v1806_v3 }
 0x40f   : > { %3730 = vmatpush3.bf16.msra.mxu1 %v3727_v51  ;;  %3446 = vmatprep.mubr.f32.mxu1 %v1807_v40 }
 0x410   : > { %3732 = vmatprep.subr.bf16.mxu1 %v3731_v52 }
 0x412   : > { %3447 = vmatmul.mubr.f32.gmra.mrb[18].mxu1 %v1808_v49 }
 0x413   : > { %3449 = vmatprep.mubr.f32.mxu1 %v1809_v5  ;;  %3734 = vmatpush3.bf16.msra.mxu1 %v3731_v52 }
 0x414   : > { %3736 = vmatprep.subr.bf16.mxu1 %v3735_v45 }
 0x416   : > { %3450 = vmatmul.mubr.f32.gmra.mrb[20].mxu1 %v1810_v61 }
 0x417   : > { %3452 = vmatprep.mubr.f32.mxu1 %v1811_v62  ;;  %3738 = vmatpush3.bf16.msra.mxu1 %v3735_v45  ;;  %v2139_v62 = vld [vmem:[%s5232_s7 + $0x18] sm:$0xff] }
 0x418   : > { %3740 = vmatprep.subr.bf16.mxu1 %v3739_v60 }
 0x41a   : > { %3453 = vmatmul.mubr.f32.gmra.mrb[22].mxu1 %v1812_v24  ;;  %v2138_v24 = vld [vmem:[%s5232_s7 + $0x10] sm:$0xff] }
 0x41b   : > { %3742 = vmatpush3.bf16.msra.mxu1 %v3739_v60  ;;  %3487 = vmatprep.mubr.f32.mxu1 %v1991_v13 }
 0x41c   : > { %3744 = vmatprep.subr.bf16.mxu1 %v3743_v27 }
 0x41f   : > { %3746 = vmatpush3.bf16.msra.mxu1 %v3743_v27 }
 0x420   : > { %3748 = vmatprep.subr.bf16.mxu1 %v3747_v58 }
 0x423   : > { %3750 = vmatpush3.bf16.msra.mxu1 %v3747_v58  ;;  %v2141_v58 = vld [vmem:[%s5232_s7 + $0x28] sm:$0xff] }
 0x424   : > { %3752 = vmatprep.subr.bf16.mxu1 %v3751_v0 }
 0x427   : > { %3754 = vmatpush3.bf16.msra.mxu1 %v3751_v0 }
 0x428   : > { %3756 = vmatprep.subr.bf16.mxu1 %v3755_v14 }
 0x42b   : > { %3758 = vmatpush3.bf16.msra.mxu1 %v3755_v14 }
 0x42c   : > { %3807 = vmatprep.subr.bf16.mxu1 %v3759_v2 }
 0x42e   : > { %3488 = vmatmul.mubr.f32.vlgmr.msra.gmra.mrb[16].mxu1 %v1992_v59  ;;  %v2142_v59 = vld [vmem:[%s5232_s7 + $0x30] sm:$0xff] }
 0x42f   : > { %3490 = vmatprep.mubr.f32.mxu1 %v1993_v46  ;;  %3809 = vmatpush3.bf16.msra.mxu1 %v3759_v2 }
 0x432   : > { %3491 = vmatmul.mubr.f32.gmra.mrb[18].mxu1 %v4788_v20  ;;  %v3763_v20 = vpack.c.bf16 %v2135_v15, %v2134_v35 }
 0x433   : > { %3493 = vmatprep.mubr.f32.mxu1 %v1995_v41  ;;  %v2143_v41 = vld [vmem:[%s5232_s7 + $0x38] sm:$0xff] }
 0x434   : > { %3764 = vmatprep.subr.bf16.mxu0 %v3763_v20  ;;  %3808 = vmatprep.subr.bf16.mxu1 %v3763_v20 }
 0x435   : > { %3766 = vmatpush3.bf16.msra.mxu0 %v3763_v20  ;;  %3810 = vmatpush3.bf16.msra.mxu1 %v3763_v20 }
 0x436   : > { %3494 = vmatmul.mubr.f32.gmra.mrb[20].mxu1 %v1996_v23 }
 0x437   : > { %3496 = vmatprep.mubr.f32.mxu1 %v4797_v31 }
 0x43a   : > { %3497 = vmatmul.mubr.f32.gmra.mrb[22].mxu1 %v4800_v12 }
 0x4c4   : > { %v3357_v31 = vpop.f32.mrb[32].mxu0 }
 0x4c5   : > { %v1616_v12 = vpop.f32.mrb[33].mxu0 }
 0x4c8   : > { %v3360_v9 = vpop.f32.mrb[34].mxu0 }
 0x4c9   : > { %v1626_v1 = vpop.f32.mrb[35].mxu0 }
 0x4cc   : > { %v3363_v10 = vpop.f32.mrb[36].mxu0 }
 0x4cd   : > { %v1636_v36 = vpop.f32.mrb[37].mxu0 }
 0x4d0   : > { %v3366_v6 = vpop.f32.mrb[38].mxu0 }
 0x4d1   : > { %v1646_v28 = vpop.f32.mrb[39].mxu0 }
 0x501   : > { %v3489_v22 = vpop.f32.mrb[16].mxu1 }
 0x502   : > { %v3811_v30 = vadd.f32 %v3489_v22, %v3357_v31  ;;  %v2085_v38 = vpop.f32.mrb[17].mxu1 }
 0x503   : > { %v3812_v21 = vadd.f32 %v2085_v38, %v1616_v12 }
 0x505   : > { %v3492_v18 = vpop.f32.mrb[18].mxu1  ;;  %3507 = vmatprep.mubr.msk.f32.mxu0 %vm387_vm0, %v3812_v21 }
 0x506   : > { %v3813_v3 = vadd.f32 %v3492_v18, %v3360_v9  ;;  %v2095_v51 = vpop.f32.mrb[19].mxu1  ;;  %3508 = vmatmul.mubr.msk.f32.vlgmr.msra.gmra.mrb[40].mxu0 %vm387_vm0, %v3811_v30 }
 0x507   : > { %v3814_v17 = vadd.f32 %v2095_v51, %v1626_v1 }
 0x509   : > { %v3495_v8 = vpop.f32.mrb[20].mxu1  ;;  %3510 = vmatprep.mubr.msk.f32.mxu0 %vm387_vm0, %v3814_v17 }
 0x50a   : > { %v3815_v40 = vadd.f32 %v3495_v8, %v3363_v10  ;;  %v2105_v37 = vpop.f32.mrb[21].mxu1  ;;  %3511 = vmatmul.mubr.msk.f32.gmra.mrb[42].mxu0 %vm387_vm0, %v3813_v3 }
 0x50b   : > { %v3816_v42 = vadd.f32 %v2105_v37, %v1636_v36 }
 0x50d   : > { %v3498_v52 = vpop.f32.mrb[22].mxu1  ;;  %3513 = vmatprep.mubr.msk.f32.mxu0 %vm387_vm0, %v3816_v42 }
 0x50e   : > { %v3817_v32 = vadd.f32 %v3498_v52, %v3366_v6  ;;  %v2115_v63 = vpop.f32.mrb[23].mxu1  ;;  %3514 = vmatmul.mubr.msk.f32.gmra.mrb[44].mxu0 %vm387_vm0, %v3815_v40 }
 0x50f   : > { %v3818_v49 = vadd.f32 %v2115_v63, %v1646_v28 }
 0x511   : > { %3516 = vmatprep.mubr.msk.f32.mxu1 %vm387_vm0, %v3818_v49 }
 0x512   : > { %3517 = vmatmul.mubr.msk.f32.vlgmr.msra.gmra.mrb[24].mxu1 %vm387_vm0, %v3817_v32 }
 0x5d9   : > { %v3509_v5 = vpop.f32.mrb[40].mxu0 }
 0x5da   : > { %v2240_v45 = vadd.f32 %v3509_v5, %v2137_v56  ;;  %v2234_v11 = vpop.f32.mrb[41].mxu0 }
 0x5db   : > { %v2235_v7 = vadd.f32 %v2234_v11, %v2136_v55 }
 0x5dc   : > { %v2276_v61 = vsel %vm387_vm0, %v2240_v45, 0.0 }
 0x5dd   : > { %2277 = vadd.xlane.f32.xlu1 %v2276_v61  ;;  %v3512_v4 = vpop.f32.mrb[42].mxu0  ;;  %v2273_v29 = vsel %vm387_vm0, %v2235_v7, 0.0 }
 0x5de   : > { %v2244_v60 = vpop.f32.mrb[43].mxu0  ;;  %v2250_v48 = vadd.f32 %v3512_v4, %v2139_v62 }
 0x5df   : > { %v2245_v57 = vadd.f32 %v2244_v60, %v2138_v24  ;;  %v2402_v24 = vld [vmem:[%s5230_s5] sm:$0xff] }
 0x5e0   : > { %v2282_v39 = vsel %vm387_vm0, %v2250_v48, 0.0 }
 0x5e1   : > { %2274 = vadd.xlane.f32.xlu1 %v2273_v29  ;;  %v3515_v13 = vpop.f32.mrb[44].mxu0  ;;  %v2279_v43 = vsel %vm387_vm0, %v2245_v57, 0.0 }
 0x5e2   : > { %v2254_v27 = vpop.f32.mrb[45].mxu0  ;;  %v2260_v0 = vadd.f32 %v3515_v13, %v2141_v58  ;;  %v2403_v13 = vld [vmem:[%s5230_s5 + $0x8] sm:$0xff] }
 0x5e3   : > { %v2255_v14 = vadd.f32 %v2254_v27, %v2140_v19  ;;  %v3767_v27 = vpack.c.bf16 %v2403_v13, %v2402_v24  ;;  %v2553_v24 = vld [vmem:[%s5231_s6 + $0x30] sm:$0xff]  ;;  %v2554_v13 = vld [vmem:[%s5231_s6 + $0x38] sm:$0xff] }
 0x5e4   : > { %v2288_v25 = vsel %vm387_vm0, %v2260_v0, 0.0 }
 0x5e5   : > { %2283 = vadd.xlane.f32.xlu1 %v2282_v39  ;;  %v3518_v50 = vpop.f32.mrb[24].mxu1  ;;  %v2285_v26 = vsel %vm387_vm0, %v2255_v14, 0.0  ;;  %3768 = vmatprep.subr.bf16.mxu0 %v3767_v27  ;;  %v2405_v39 = vld [vmem:[%s5230_s5 + $0x18] sm:$0xff] }
 0x5e6   : > { %v2264_v44 = vpop.f32.mrb[25].mxu1  ;;  %v2270_v23 = vadd.f32 %v3518_v50, %v2143_v41  ;;  %3770 = vmatpush3.bf16.msra.mxu0 %v3767_v27  ;;  %v2547_v50 = vld [vmem:[%s5231_s6] sm:$0xff] }
 0x5e7   : > { %v2265_v46 = vadd.f32 %v2264_v44, %v2142_v59  ;;  %v2548_v44 = vld [vmem:[%s5231_s6 + $0x8] sm:$0xff] }
 0x5e8   : > { %v2294_v47 = vsel %vm387_vm0, %v2270_v23, 0.0 }
 0x5e9   : > { %2280 = vadd.xlane.f32.xlu1 %v2279_v43  ;;  %v2291_v16 = vsel %vm387_vm0, %v2265_v46, 0.0 }
 0x5ed   : > { %2289 = vadd.xlane.f32.xlu1 %v2288_v25 }
 0x5f1   : > { %2286 = vadd.xlane.f32.xlu1 %v2285_v26 }
 0x5f5   : > { %2292 = vadd.xlane.f32.xlu1 %v2291_v16 }
 0x5f9   : > { %2295 = vadd.xlane.f32.xlu1 %v2294_v47 }
 0x66a   : > { %v2278_v35 = vpop.xlane.xlu1 %2277 }
 0x66b   : > { %v2299_v2 = vmul.f32 0.03125, %v2278_v35 }
 0x66d   : > { %v4928_v15 = vsub.f32 %v2240_v45, %v2299_v2 }
 0x66e   : > { %v2275_v20 = vpop.xlane.xlu1 %2274 }
 0x66f   : > { %v2298_v31 = vmul.f32 0.03125, %v2275_v20  ;;  %v2315_v12 = vmul.f32 %v4928_v15, %v4928_v15  ;;  %v4989_v20 = vld [vmem:[%s5233_s8] sm:$0xff] }
 0x671   : > { %v4932_v9 = vsub.f32 %v2235_v7, %v2298_v31  ;;  %v2325_v1 = vsel %vm387_vm0, %v2315_v12, 0.0  ;;  %v4994_v31 = vrot.slane %v4989_v20, %v2001_v34 }
 0x672   : > { %v2284_v10 = vpop.xlane.xlu1 %2283  ;;  %2326 = vadd.xlane.f32.xlu1 %v2325_v1  ;;  %v2392_v1 = vsub.s32 5, %v4262_v53 }
 0x673   : > { %v2301_v36 = vmul.f32 0.03125, %v2284_v10  ;;  %v2314_v6 = vmul.f32 %v4932_v9, %v4932_v9 }
 0x675   : > { %v4937_v28 = vsub.f32 %v2250_v48, %v2301_v36  ;;  %v2322_v22 = vsel %vm387_vm0, %v2314_v6, 0.0 }
 0x676   : > { %v2281_v30 = vpop.xlane.xlu1 %2280  ;;  %2323 = vadd.xlane.f32.xlu1 %v2322_v22 }
 0x677   : > { %v2300_v38 = vmul.f32 0.03125, %v2281_v30  ;;  %v2317_v21 = vmul.f32 %v4937_v28, %v4937_v28 }
 0x679   : > { %v4942_v18 = vsub.f32 %v2245_v57, %v2300_v38  ;;  %v2331_v3 = vsel %vm387_vm0, %v2317_v21, 0.0  ;;  %v2404_v57 = vld [vmem:[%s5230_s5 + $0x10] sm:$0xff]  ;;  %v5000_v21 = vrot.slane %v4989_v20, %v2392_v1 }
 0x67a   : > { %v2290_v51 = vpop.xlane.xlu1 %2289  ;;  %2332 = vadd.xlane.f32.xlu1 %v2331_v3  ;;  %v3771_v58 = vpack.c.bf16 %v2405_v39, %v2404_v57 }
 0x67b   : > { %v2303_v17 = vmul.f32 0.03125, %v2290_v51  ;;  %v2316_v8 = vmul.f32 %v4942_v18, %v4942_v18  ;;  %v2549_v51 = vld [vmem:[%s5231_s6 + $0x10] sm:$0xff] }
 0x67c   : > { %3772 = vmatprep.subr.bf16.mxu0 %v3771_v58 }
 0x67d   : > { %v4947_v40 = vsub.f32 %v2260_v0, %v2303_v17  ;;  %v2328_v37 = vsel %vm387_vm0, %v2316_v8, 0.0  ;;  %3774 = vmatpush3.bf16.msra.mxu0 %v3771_v58  ;;  %v3775_v0 = vpack.c.bf16 %v2548_v44, %v2547_v50  ;;  %v3787_v50 = vpack.c.bf16 %v2554_v13, %v2553_v24  ;;  %v2555_v44 = vld [vmem:[%s5231_s6 + $0x40] sm:$0xff] }
 0x67e   : > { %v2287_v42 = vpop.xlane.xlu1 %2286  ;;  %2329 = vadd.xlane.f32.xlu1 %v2328_v37 }
 0x67f   : > { %v2302_v52 = vmul.f32 0.03125, %v2287_v42  ;;  %v2319_v32 = vmul.f32 %v4947_v40, %v4947_v40  ;;  %3776 = vmatprep.subr.bf16.mxu0 %v3775_v0 }
 0x681   : > { %v4952_v63 = vsub.f32 %v2255_v14, %v2302_v52  ;;  %v2337_v49 = vsel %vm387_vm0, %v2319_v32, 0.0 }
 0x682   : > { %2338 = vadd.xlane.f32.xlu1 %v2337_v49  ;;  %v2293_v56 = vpop.xlane.xlu1 %2292 }
 0x683   : > { %v2304_v5 = vmul.f32 0.03125, %v2293_v56  ;;  %v2318_v55 = vmul.f32 %v4952_v63, %v4952_v63 }
 0x685   : > { %v4957_v45 = vsub.f32 %v2265_v46, %v2304_v5  ;;  %v2334_v11 = vsel %vm387_vm0, %v2318_v55, 0.0  ;;  %v2551_v5 = vld [vmem:[%s5231_s6 + $0x20] sm:$0xff]  ;;  %v2552_v55 = vld [vmem:[%s5231_s6 + $0x28] sm:$0xff] }
 0x686   : > { %2335 = vadd.xlane.f32.xlu1 %v2334_v11  ;;  %v2296_v7 = vpop.xlane.xlu1 %2295 }
 0x687   : > { %v2305_v61 = vmul.f32 0.03125, %v2296_v7  ;;  %v2320_v62 = vmul.f32 %v4957_v45, %v4957_v45 }
 0x689   : > { %v4962_v4 = vsub.f32 %v2270_v23, %v2305_v61  ;;  %v2340_v60 = vsel %vm387_vm0, %v2320_v62, 0.0 }
 0x68a   : > { %2341 = vadd.xlane.f32.xlu1 %v2340_v60 }
 0x68b   : > { %v2321_v48 = vmul.f32 %v4962_v4, %v4962_v4 }
 0x68d   : > { %v2343_v29 = vsel %vm387_vm0, %v2321_v48, 0.0  ;;  %v3783_v48 = vpack.c.bf16 %v2552_v55, %v2551_v5 }
 0x68e   : > { %2344 = vadd.xlane.f32.xlu0 %v2343_v29 }
 0x6ff   : > { %v2327_v43 = vpop.xlane.xlu1 %2326 }
 0x700   : > { %v2347_v19 = vmul.f32 0.03125, %v2327_v43 }
 0x702   : > { %v2355_v14 = vadd.f32 1e-05, %v2347_v19 }
 0x703   : > { %v2324_v25 = vpop.xlane.xlu1 %2323 }
 0x704   : > { %3944 = vrsqrt.f32 %v2355_v14  ;;  %v2346_v59 = vmul.f32 0.03125, %v2324_v25 }
 0x706   : > { %v2354_v46 = vadd.f32 1e-05, %v2346_v59  ;;  %v2557_v59 = vld [vmem:[%s5231_s6 + $0x50] sm:$0xff] }
 0x707   : > { %v2333_v26 = vpop.xlane.xlu1 %2332 }
 0x708   : > { %3946 = vrsqrt.f32 %v2354_v46  ;;  %v2349_v41 = vmul.f32 0.03125, %v2333_v26  ;;  %v2558_v46 = vld [vmem:[%s5231_s6 + $0x58] sm:$0xff] }
 0x70a   : > { %v2357_v23 = vadd.f32 1e-05, %v2349_v41 }
 0x70b   : > { %v2330_v16 = vpop.xlane.xlu1 %2329 }
 0x70c   : > { %3948 = vrsqrt.f32 %v2357_v23  ;;  %v2348_v47 = vmul.f32 0.03125, %v2330_v16  ;;  %v3795_v16 = vpack.c.bf16 %v2558_v46, %v2557_v59 }
 0x70e   : > { %v3945_v35 = vpop.eup %3944  ;;  %v2356_v2 = vadd.f32 1e-05, %v2348_v47 }
 0x70f   : > { %v2339_v12 = vpop.xlane.xlu1 %2338  ;;  %v2371_v10 = vmul.f32 %v3945_v35, %v4928_v15  ;;  %v2550_v15 = vld [vmem:[%s5231_s6 + $0x18] sm:$0xff]  ;;  %v2559_v35 = vld [vmem:[%s5231_s6 + $0x60] sm:$0xff] }
 0x710   : > { %3950 = vrsqrt.f32 %v2356_v2  ;;  %v2351_v36 = vmul.f32 0.03125, %v2339_v12  ;;  %v3779_v52 = vpack.c.bf16 %v2550_v15, %v2549_v51  ;;  %v2560_v2 = vld [vmem:[%s5231_s6 + $0x68] sm:$0xff] }
 0x711   : > { %v2383_v3 = vmul.f32 %v4994_v31, %v2371_v10  ;;  %v3799_v10 = vpack.c.bf16 %v2560_v2, %v2559_v35 }
 0x712   : > { %v3947_v6 = vpop.eup %3946  ;;  %v2359_v22 = vadd.f32 1e-05, %v2351_v36 }
 0x713   : > { %v2336_v30 = vpop.xlane.xlu1 %2335  ;;  %v2370_v38 = vmul.f32 %v3947_v6, %v4932_v9  ;;  %v5014_v32 = vadd.f32 %v5000_v21, %v2383_v3 }
 0x714   : > { %3952 = vrsqrt.f32 %v2359_v22  ;;  %v2350_v34 = vmul.f32 0.03125, %v2336_v30  ;;  %v2562_v22 = vld [vmem:[%s5231_s6 + $0x78] sm:$0xff] }
 0x715   : > { %v2382_v17 = vmul.f32 %v4994_v31, %v2370_v38 }
 0x716   : > { %v3949_v8 = vpop.eup %3948  ;;  %v2358_v37 = vadd.f32 1e-05, %v2350_v34 }
 0x717   : > { %v2342_v9 = vpop.xlane.xlu1 %2341  ;;  %v5011_v42 = vadd.f32 %v5000_v21, %v2382_v17  ;;  %v2373_v56 = vmul.f32 %v3949_v8, %v4937_v28 }
 0x718   : > { %3954 = vrsqrt.f32 %v2358_v37  ;;  %v2352_v49 = vmul.f32 0.03125, %v2342_v9 }
 0x719   : > { %3527 = vmatprep.mubr.msk.f32.mxu0 %vm387_vm0, %v5011_v42  ;;  %v2385_v60 = vmul.f32 %v4994_v31, %v2373_v56 }
 0x71a   : > { %v3951_v11 = vpop.eup %3950  ;;  %v2360_v7 = vadd.f32 1e-05, %v2352_v49  ;;  %3528 = vmatmul.mubr.msk.f32.vlgmr.msra.gmra.mrb[46].mxu0 %vm387_vm0, %v5014_v32 }
 0x71b   : > { %v2345_v61 = vpop.xlane.xlu0 %2344  ;;  %v2372_v62 = vmul.f32 %v3951_v11, %v4942_v18  ;;  %3778 = vmatpush3.bf16.msra.mxu0 %v3775_v0  ;;  %v5040_v39 = vadd.f32 %v5000_v21, %v2385_v60  ;;  %v2556_v0 = vld [vmem:[%s5231_s6 + $0x48] sm:$0xff] }
 0x71c   : > { %3956 = vrsqrt.f32 %v2360_v7  ;;  %v2353_v28 = vmul.f32 0.03125, %v2345_v61  ;;  %3780 = vmatprep.subr.bf16.mxu0 %v3779_v52  ;;  %v3791_v14 = vpack.c.bf16 %v2556_v0, %v2555_v44 }
 0x71d   : > { %v2384_v29 = vmul.f32 %v4994_v31, %v2372_v62 }
 0x71e   : > { %v3953_v27 = vpop.eup %3952  ;;  %v2361_v57 = vadd.f32 1e-05, %v2353_v28 }
 0x71f   : > { %v5037_v18 = vadd.f32 %v5000_v21, %v2384_v29  ;;  %3782 = vmatpush3.bf16.msra.mxu0 %v3779_v52  ;;  %v2375_v58 = vmul.f32 %v3953_v27, %v4947_v40 }
 0x720   : > { %3958 = vrsqrt.f32 %v2361_v57  ;;  %3784 = vmatprep.subr.bf16.mxu0 %v3783_v48 }
 0x721   : > { %3530 = vmatprep.mubr.msk.f32.mxu0 %vm387_vm0, %v5037_v18  ;;  %v2387_v40 = vmul.f32 %v4994_v31, %v2375_v58  ;;  %v2565_v58 = vsub.s32 6, %v4262_v53 }
 0x722   : > { %v3955_v43 = vpop.eup %3954  ;;  %3531 = vmatmul.mubr.msk.f32.gmra.mrb[48].mxu0 %vm387_vm0, %v5040_v39 }
 0x723   : > { %v2374_v19 = vmul.f32 %v3955_v43, %v4952_v63  ;;  %3786 = vmatpush3.bf16.msra.mxu0 %v3783_v48  ;;  %v5067_v23 = vadd.f32 %v5000_v21, %v2387_v40 }
 0x724   : > { %3788 = vmatprep.subr.bf16.mxu0 %v3787_v50 }
 0x725   : > { %v2386_v25 = vmul.f32 %v4994_v31, %v2374_v19 }
 0x726   : > { %v3957_v26 = vpop.eup %3956 }
 0x727   : > { %v5063_v41 = vadd.f32 %v5000_v21, %v2386_v25  ;;  %v2376_v63 = vmul.f32 %v3957_v26, %v4957_v45  ;;  %3790 = vmatpush3.bf16.msra.mxu0 %v3787_v50  ;;  %v2566_v50 = vrot.slane %v4989_v20, %v2565_v58 }
 0x728   : > { %3792 = vmatprep.subr.bf16.mxu0 %v3791_v14 }
 0x729   : > { %3533 = vmatprep.mubr.msk.f32.mxu0 %vm387_vm0, %v5063_v41  ;;  %v2388_v47 = vmul.f32 %v4994_v31, %v2376_v63 }
 0x72a   : > { %v3959_v45 = vpop.eup %3958  ;;  %3534 = vmatmul.mubr.msk.f32.gmra.mrb[50].mxu0 %vm387_vm0, %v5067_v23 }
 0x72b   : > { %v5081_v12 = vadd.f32 %v5000_v21, %v2388_v47  ;;  %v2377_v1 = vmul.f32 %v3959_v45, %v4962_v4  ;;  %3794 = vmatpush3.bf16.msra.mxu0 %v3791_v14  ;;  %v2561_v4 = vld [vmem:[%s5231_s6 + $0x70] sm:$0xff] }
 0x72c   : > { %3796 = vmatprep.subr.bf16.mxu0 %v3795_v16  ;;  %v3803_v30 = vpack.c.bf16 %v2562_v22, %v2561_v4 }
 0x72d   : > { %3536 = vmatprep.mubr.msk.f32.mxu0 %vm387_vm0, %v5081_v12  ;;  %v2389_v36 = vmul.f32 %v4994_v31, %v2377_v1  ;;  %v5243_v31 = vsub.s32 1, %v4262_v53 }
 0x72f   : > { %v5088_v6 = vadd.f32 %v5000_v21, %v2389_v36  ;;  %3798 = vmatpush3.bf16.msra.mxu0 %v3795_v16  ;;  %v2409_v38 = vrot.slane %v4989_v20, %v5243_v31 }
 0x730   : > { %3800 = vmatprep.subr.bf16.mxu0 %v3799_v10 }
 0x731   : > { %3537 = vmatmul.mubr.msk.f32.gmra.mrb[52].mxu0 %vm387_vm0, %v5088_v6 }
 0x733   : > { %3802 = vmatpush3.bf16.msra.mxu0 %v3799_v10 }
 0x734   : > { %3804 = vmatprep.subr.bf16.mxu0 %v3803_v30 }
 0x737   : > { %3806 = vmatpush3.bf16.msra.mxu0 %v3803_v30 }
 0x7ed   : > { %v3529_v21 = vpop.f32.mrb[46].mxu0 }
 0x7ee   : > { %v2506_v3 = vadd.f32 %v3529_v21, %v2409_v38  ;;  %v2500_v34 = vpop.f32.mrb[47].mxu0 }
 0x7ef   : > { %v2501_v51 = vadd.f32 %v2500_v34, %v2409_v38 }
 0x7f0   : > { %v2540_v17 = vmax.f32 %v2506_v3, 0.0 }
 0x7f1   : > { %v2539_v15 = vmax.f32 %v2501_v51, 0.0 }
 0x7f3   : > { %3571 = vmatprep.mubr.f32.mxu0 %v2539_v15 }
 0x7f4   : > { %3572 = vmatmul.mubr.f32.vlgmr.msra.gmra.mrb[54].mxu0 %v2540_v17 }
 0x7f5   : > { %v3532_v8 = vpop.f32.mrb[48].mxu0 }
 0x7f6   : > { %v2516_v37 = vadd.f32 %v3532_v8, %v2409_v38  ;;  %v2510_v9 = vpop.f32.mrb[49].mxu0 }
 0x7f7   : > { %v2511_v52 = vadd.f32 %v2510_v9, %v2409_v38 }
 0x7f8   : > { %v2542_v56 = vmax.f32 %v2516_v37, 0.0 }
 0x7f9   : > { %v2541_v49 = vmax.f32 %v2511_v52, 0.0 }
 0x7fb   : > { %3574 = vmatprep.mubr.f32.mxu0 %v2541_v49 }
 0x7fc   : > { %3575 = vmatmul.mubr.f32.gmra.mrb[56].mxu0 %v2542_v56 }
 0x7fd   : > { %v3535_v5 = vpop.f32.mrb[50].mxu0 }
 0x7fe   : > { %v2526_v55 = vadd.f32 %v3535_v5, %v2409_v38  ;;  %v2520_v11 = vpop.f32.mrb[51].mxu0 }
 0x7ff   : > { %v2521_v7 = vadd.f32 %v2520_v11, %v2409_v38 }
 0x800   : > { %v2544_v62 = vmax.f32 %v2526_v55, 0.0 }
 0x801   : > { %v2543_v61 = vmax.f32 %v2521_v7, 0.0 }
 0x803   : > { %3577 = vmatprep.mubr.f32.mxu0 %v2543_v61 }
 0x804   : > { %v3538_v28 = vpop.f32.mrb[52].mxu0  ;;  %3578 = vmatmul.mubr.f32.gmra.mrb[58].mxu0 %v2544_v62 }
 0x805   : > { %v2536_v60 = vadd.f32 %v3538_v28, %v2409_v38  ;;  %v2530_v48 = vpop.f32.mrb[53].mxu0 }
 0x806   : > { %v2531_v29 = vadd.f32 %v2530_v48, %v2409_v38 }
 0x807   : > { %v2546_v13 = vmax.f32 %v2536_v60, 0.0 }
 0x808   : > { %v2545_v24 = vmax.f32 %v2531_v29, 0.0 }
 0x80a   : > { %3580 = vmatprep.mubr.f32.mxu0 %v2545_v24 }
 0x80b   : > { %3581 = vmatmul.mubr.f32.gmra.mrb[60].mxu0 %v2546_v13 }
 0x8c7   : > { %v3573_v27 = vpop.f32.mrb[54].mxu0 }
 0x8c8   : > { %v2633_v57 = vpop.f32.mrb[55].mxu0  ;;  %v2639_v34 = vadd.f32 %v3573_v27, %v2566_v50 }
 0x8c9   : > { %v2634_v30 = vadd.f32 %v2633_v57, %v2566_v50 }
 0x8cb   : > { %v2672_v51 = vmax.f32 %v2634_v30, 0.0 }
 0x8cd   : > { %v2680_v8 = vadd.f32 %v2672_v51, %v5011_v42 }
 0x8cf   : > { %v3576_v44 = vpop.f32.mrb[56].mxu0  ;;  %v2688_v37 = vsel %vm387_vm0, %v2680_v8, 0.0 }
 0x8d0   : > { %v2649_v0 = vadd.f32 %v3576_v44, %v2566_v50  ;;  %v2643_v43 = vpop.f32.mrb[57].mxu0 }
 0x8d1   : > { %v2644_v19 = vadd.f32 %v2643_v43, %v2566_v50 }
 0x8d2   : > { %v2675_v40 = vmax.f32 %v2649_v0, 0.0 }
 0x8d3   : > { %v2674_v14 = vmax.f32 %v2644_v19, 0.0 }
 0x8d4   : > { %v2683_v25 = vadd.f32 %v2675_v40, %v5040_v39 }
 0x8d5   : > { %v2682_v46 = vadd.f32 %v2674_v14, %v5037_v18 }
 0x8d6   : > { %v2697_v59 = vsel %vm387_vm0, %v2683_v25, 0.0 }
 0x8d7   : > { %2698 = vadd.xlane.f32.xlu1 %v2697_v59  ;;  %v3579_v26 = vpop.f32.mrb[58].mxu0  ;;  %v2694_v2 = vsel %vm387_vm0, %v2682_v46, 0.0 }
 0x8d8   : > { %v2659_v63 = vadd.f32 %v3579_v26, %v2566_v50  ;;  %v2653_v16 = vpop.f32.mrb[59].mxu0 }
 0x8d9   : > { %v2654_v47 = vadd.f32 %v2653_v16, %v2566_v50 }
 0x8da   : > { %v2677_v35 = vmax.f32 %v2659_v63, 0.0 }
 0x8db   : > { %v2676_v45 = vmax.f32 %v2654_v47, 0.0  ;;  %2695 = vadd.xlane.f32.xlu1 %v2694_v2 }
 0x8dc   : > { %v2685_v1 = vadd.f32 %v2677_v35, %v5067_v23 }
 0x8dd   : > { %v2684_v39 = vadd.f32 %v2676_v45, %v5063_v41  ;;  %v2673_v41 = vmax.f32 %v2639_v34, 0.0 }
 0x8de   : > { %v3582_v10 = vpop.f32.mrb[60].mxu0  ;;  %v2703_v36 = vsel %vm387_vm0, %v2685_v1, 0.0 }
 0x8df   : > { %v2669_v4 = vadd.f32 %v3582_v10, %v2566_v50  ;;  %2704 = vadd.xlane.f32.xlu1 %v2703_v36  ;;  %v2663_v18 = vpop.f32.mrb[61].mxu0  ;;  %v2700_v21 = vsel %vm387_vm0, %v2684_v39, 0.0  ;;  %v2681_v9 = vadd.f32 %v2673_v41, %v5014_v32 }
 0x8e0   : > { %v2664_v22 = vadd.f32 %v2663_v18, %v2566_v50 }
 0x8e1   : > { %v2679_v31 = vmax.f32 %v2669_v4, 0.0 }
 0x8e2   : > { %v2678_v38 = vmax.f32 %v2664_v22, 0.0 }
 0x8e3   : > { %2701 = vadd.xlane.f32.xlu1 %v2700_v21  ;;  %v2687_v15 = vadd.f32 %v2679_v31, %v5088_v6  ;;  %v2794_v21 = vsub.s32 7, %v4262_v53 }
 0x8e4   : > { %v2686_v3 = vadd.f32 %v2678_v38, %v5081_v12  ;;  %v2691_v12 = vsel %vm387_vm0, %v2681_v9, 0.0 }
 0x8e5   : > { %v2709_v17 = vsel %vm387_vm0, %v2687_v15, 0.0 }
 0x8e6   : > { %v2706_v23 = vsel %vm387_vm0, %v2686_v3, 0.0 }
 0x8e7   : > { %2707 = vadd.xlane.f32.xlu1 %v2706_v23  ;;  %v2795_v23 = vrot.slane %v4989_v20, %v2794_v21 }
 0x8eb   : > { %2710 = vadd.xlane.f32.xlu1 %v2709_v17 }
 0x8ef   : > { %2689 = vadd.xlane.f32.xlu1 %v2688_v37  ;;  %v2807_v37 = vrot.slane %v4811_v33, %v4265_v54 }
 0x8f3   : > { %2692 = vadd.xlane.f32.xlu1 %v2691_v12 }
 0x964   : > { %v2699_v52 = vpop.xlane.xlu1 %2698 }
 0x965   : > { %v2715_v49 = vmul.f32 0.03125, %v2699_v52 }
 0x967   : > { %v5119_v56 = vsub.f32 %v2683_v25, %v2715_v49 }
 0x968   : > { %v2696_v6 = vpop.xlane.xlu1 %2695 }
 0x969   : > { %v2714_v5 = vmul.f32 0.03125, %v2696_v6  ;;  %v2731_v55 = vmul.f32 %v5119_v56, %v5119_v56 }
 0x96b   : > { %v5123_v11 = vsub.f32 %v2682_v46, %v2714_v5  ;;  %v2745_v42 = vsel %vm387_vm0, %v2731_v55, 0.0 }
 0x96c   : > { %v2705_v7 = vpop.xlane.xlu1 %2704  ;;  %2746 = vadd.xlane.f32.xlu1 %v2745_v42 }
 0x96d   : > { %v2717_v32 = vmul.f32 0.03125, %v2705_v7  ;;  %v2730_v61 = vmul.f32 %v5123_v11, %v5123_v11 }
 0x96f   : > { %v5128_v62 = vsub.f32 %v2685_v1, %v2717_v32  ;;  %v2742_v28 = vsel %vm387_vm0, %v2730_v61, 0.0 }
 0x970   : > { %v2702_v60 = vpop.xlane.xlu1 %2701  ;;  %2743 = vadd.xlane.f32.xlu1 %v2742_v28 }
 0x971   : > { %v2716_v48 = vmul.f32 0.03125, %v2702_v60  ;;  %v2733_v29 = vmul.f32 %v5128_v62, %v5128_v62 }
 0x973   : > { %v5133_v24 = vsub.f32 %v2684_v39, %v2716_v48  ;;  %v2751_v13 = vsel %vm387_vm0, %v2733_v29, 0.0 }
 0x974   : > { %2752 = vadd.xlane.f32.xlu0 %v2751_v13  ;;  %v2708_v27 = vpop.xlane.xlu1 %2707 }
 0x975   : > { %v2718_v57 = vmul.f32 0.03125, %v2708_v27  ;;  %v2732_v58 = vmul.f32 %v5133_v24, %v5133_v24 }
 0x977   : > { %v5138_v50 = vsub.f32 %v2686_v3, %v2718_v57  ;;  %v2748_v44 = vsel %vm387_vm0, %v2732_v58, 0.0 }
 0x978   : > { %2749 = vadd.xlane.f32.xlu1 %v2748_v44  ;;  %v2711_v0 = vpop.xlane.xlu1 %2710 }
 0x979   : > { %v2719_v43 = vmul.f32 0.03125, %v2711_v0  ;;  %v2734_v19 = vmul.f32 %v5138_v50, %v5138_v50 }
 0x97b   : > { %v5143_v40 = vsub.f32 %v2687_v15, %v2719_v43  ;;  %v2754_v14 = vsel %vm387_vm0, %v2734_v19, 0.0 }
 0x97c   : > { %2755 = vadd.xlane.f32.xlu1 %v2754_v14  ;;  %v2690_v25 = vpop.xlane.xlu1 %2689 }
 0x97d   : > { %v2712_v59 = vmul.f32 0.03125, %v2690_v25  ;;  %v2735_v46 = vmul.f32 %v5143_v40, %v5143_v40 }
 0x97f   : > { %v5148_v26 = vsub.f32 %v2680_v8, %v2712_v59  ;;  %v2757_v63 = vsel %vm387_vm0, %v2735_v46, 0.0 }
 0x980   : > { %2758 = vadd.xlane.f32.xlu0 %v2757_v63  ;;  %v2693_v16 = vpop.xlane.xlu1 %2692 }
 0x981   : > { %v2713_v47 = vmul.f32 0.03125, %v2693_v16  ;;  %v2728_v35 = vmul.f32 %v5148_v26, %v5148_v26 }
 0x983   : > { %v5153_v2 = vsub.f32 %v2681_v9, %v2713_v47  ;;  %v2736_v45 = vsel %vm387_vm0, %v2728_v35, 0.0 }
 0x984   : > { %2737 = vadd.xlane.f32.xlu1 %v2736_v45 }
 0x985   : > { %v2729_v1 = vmul.f32 %v5153_v2, %v5153_v2 }
 0x987   : > { %v2739_v10 = vsel %vm387_vm0, %v2729_v1, 0.0 }
 0x988   : > { %2740 = vadd.xlane.f32.xlu0 %v2739_v10 }
 0x9f9   : > { %v2747_v36 = vpop.xlane.xlu1 %2746 }
 0x9fa   : > { %v2763_v39 = vmul.f32 0.03125, %v2747_v36 }
 0x9fc   : > { %v2771_v4 = vadd.f32 1e-05, %v2763_v39 }
 0x9fd   : > { %v2744_v18 = vpop.xlane.xlu1 %2743 }
 0x9fe   : > { %3960 = vrsqrt.f32 %v2771_v4  ;;  %v2762_v22 = vmul.f32 0.03125, %v2744_v18 }
 0xa00   : > { %v2770_v30 = vadd.f32 1e-05, %v2762_v22 }
 0xa01   : > { %v2753_v31 = vpop.xlane.xlu0 %2752 }
 0xa02   : > { %3962 = vrsqrt.f32 %v2770_v30  ;;  %v2765_v38 = vmul.f32 0.03125, %v2753_v31 }
 0xa04   : > { %v2773_v3 = vadd.f32 1e-05, %v2765_v38 }
 0xa05   : > { %v2750_v34 = vpop.xlane.xlu1 %2749 }
 0xa06   : > { %3964 = vrsqrt.f32 %v2773_v3  ;;  %v2764_v51 = vmul.f32 0.03125, %v2750_v34 }
 0xa08   : > { %v3961_v15 = vpop.eup %3960  ;;  %v2772_v41 = vadd.f32 1e-05, %v2764_v51 }
 0xa09   : > { %v2756_v17 = vpop.xlane.xlu1 %2755  ;;  %v2787_v8 = vmul.f32 %v3961_v15, %v5119_v56 }
 0xa0a   : > { %3966 = vrsqrt.f32 %v2772_v41  ;;  %v2766_v9 = vmul.f32 0.03125, %v2756_v17 }
 0xa0b   : > { %v2799_v12 = vmul.f32 %v2795_v23, %v2787_v8 }
 0xa0c   : > { %v3963_v52 = vpop.eup %3962  ;;  %v2774_v49 = vadd.f32 1e-05, %v2766_v9 }
 0xa0d   : > { %v2759_v53 = vpop.xlane.xlu0 %2758  ;;  %v2811_v6 = vadd.f32 %v2807_v37, %v2799_v12  ;;  %v2786_v5 = vmul.f32 %v3963_v52, %v5123_v11 }
 0xa0e   : > { %3968 = vrsqrt.f32 %v2774_v49  ;;  %v2767_v55 = vmul.f32 0.03125, %v2759_v53 }
 0xa0f   : > { %2820 = vrot.lane.b32.xlu0 %v2811_v6, %s4044_s20  ;;  %v2798_v20 = vmul.f32 %v2795_v23, %v2786_v5 }
 0xa10   : > { %v3965_v42 = vpop.eup %3964  ;;  %v2775_v7 = vadd.f32 1e-05, %v2767_v55 }
 0xa11   : > { %v2738_v56 = vpop.xlane.xlu1 %2737  ;;  %v2810_v32 = vadd.f32 %v2807_v37, %v2798_v20  ;;  %v2789_v54 = vmul.f32 %v3965_v42, %v5128_v62 }
 0xa12   : > { %3970 = vrsqrt.f32 %v2775_v7  ;;  %v2760_v33 = vmul.f32 0.03125, %v2738_v56 }
 0xa13   : > { %2818 = vrot.lane.b32.xlu1 %v2810_v32, %s4044_s20  ;;  %v2801_v61 = vmul.f32 %v2795_v23, %v2789_v54  ;;  %s4046_s20 = smov [#allocation2]  }
 0xa14   : > { %v3967_v28 = vpop.eup %3966  ;;  %v2768_v60 = vadd.f32 1e-05, %v2760_v33 }
 0xa15   : > { %v2741_v48 = vpop.xlane.xlu0 %2740  ;;  %v2813_v29 = vadd.f32 %v2807_v37, %v2801_v61  ;;  %v2788_v11 = vmul.f32 %v3967_v28, %v5133_v24 }
 0xa16   : > { %3972 = vrsqrt.f32 %v2768_v60  ;;  %v2761_v13 = vmul.f32 0.03125, %v2741_v48 }
 0xa17   : > { %2828 = vrot.lane.b32.xlu1 %v2813_v29, %s4045_s21  ;;  %v2800_v27 = vmul.f32 %v2795_v23, %v2788_v11 }
 0xa18   : > { %v3969_v57 = vpop.eup %3968  ;;  %v2769_v58 = vadd.f32 1e-05, %v2761_v13 }
 0xa19   : > { %v2812_v44 = vadd.f32 %v2807_v37, %v2800_v27  ;;  %v2790_v62 = vmul.f32 %v3969_v57, %v5138_v50 }
 0xa1a   : > { %3974 = vrsqrt.f32 %v2769_v58 }
 0xa1b   : > { %2826 = vrot.lane.b32.xlu1 %v2812_v44, %s4045_s21  ;;  %v2802_v0 = vmul.f32 %v2795_v23, %v2790_v62  ;;  %s3982_s21 = sshll.u32 %s4046_s20, 4  ;;  %s3983_s21 = int_to_ptr.vmem [resolvable:$false] %s3982_s21 }
 0xa1c   : > { %v3971_v43 = vpop.eup %3970 }
 0xa1d   : > { %v2814_v19 = vadd.f32 %v2807_v37, %v2802_v0  ;;  %v2791_v14 = vmul.f32 %v3971_v43, %v5143_v40 }
 0xa1f   : > { %2834 = vrot.lane.b32.xlu0 %v2814_v19, %s4042_s30  ;;  %v2803_v24 = vmul.f32 %v2795_v23, %v2791_v14 }
 0xa20   : > { %v3973_v25 = vpop.eup %3972 }
 0xa21   : > { %v2815_v59 = vadd.f32 %v2807_v37, %v2803_v24  ;;  %v2784_v46 = vmul.f32 %v3973_v25, %v5148_v26 }
 0xa23   : > { %2836 = vrot.lane.b32.xlu1 %v2815_v59, %s4042_s30  ;;  %v2796_v63 = vmul.f32 %v2795_v23, %v2784_v46  ;;  %s353_s30 = scalar_lea.vmem [#allocation2], %s2930_s26  ;;  %s3984_s26 = scalar_lea.vmem %s3983_s21, 512 }
 0xa24   : > { %v3975_v16 = vpop.eup %3974  ;;  %s2864_s27 = sshll.u32 %s353_s30, 4  ;;  %s5177_s27 = int_to_ptr.vmem [resolvable:$true] %s2864_s27 }
 0xa25   : > { %v2785_v50 = vmul.f32 %v3975_v16, %v5153_v2  ;;  %v2808_v47 = vadd.f32 %v2807_v37, %v2796_v63  ;;  %s3978_s17 = scalar_lea.vmem %s5177_s27, 256  ;;  %p3985_p0 = scmp.lt.s32.totalorder %s5177_s27, %s3983_s21 }
 0xa26   : > { %p3979_p11 = scmp.ne.s32.totalorder %s5177_s27, %s3978_s17  ;;  %p3986_p1 = scmp.lt.s32.totalorder %s3984_s26, %s3978_s17 }
 0xa27   : > { %v2797_v35 = vmul.f32 %v2795_v23, %v2785_v50 }
 0xa28   : > { %p3980_p12 = pnand %p3979_p11, %p4142_p5  ;;  %p3987_p2 = por %p3986_p1, %p3985_p0 }
 0xa29   : > { %v2809_v45 = vadd.f32 %v2807_v37, %v2797_v35 }
 0xa2a   : > { %p3981_p13 = pneg %p3980_p12 }
 0xa2c   : > { %p3988_p3 = pnand %p3987_p2, %p3981_p13 }
 0xa81   : > { %v2821_v40 = vpop.permute.xlu0 %2820 }
 0xa82   : > { %v2841_v18 = vsel %vm387_vm0, %v2809_v45, %v2821_v40 }
 0xa85   : > { %v2819_v1 = vpop.permute.xlu1 %2818 }
 0xa86   : > { %v2840_v39 = vsel %vm387_vm0, %v2808_v47, %v2819_v1 }
 0xa89   : > { %v2829_v10 = vpop.permute.xlu1 %2828 }
 0xa8a   : > { %v2844_v22 = vsel %vm2842_vm3, %v2841_v18, %v2829_v10 }
 0xa8d   : > { %v2827_v36 = vpop.permute.xlu1 %2826 }
 0xa8e   : > { %v2843_v26 = vsel %vm2842_vm3, %v2840_v39, %v2827_v36 }
 0xa91   : > { %v2835_v4 = vpop.permute.xlu0 %2834 }
 0xa92   : > { %v2846_v2 = vsel %vm2845_vm2, %v2843_v26, %v2835_v4 }
 0xa93   : > { %2848 = vst [vmem:[%s353_s30] sm:$0xff] %v2846_v2 }
 0xa95   : > { %v2837_v30 = vpop.permute.xlu1 %2836 }
 0xa96   : > { %v2847_v31 = vsel %vm2845_vm2, %v2844_v22, %v2837_v30 }
 0xa97   : > { %2849 = vst [vmem:[%s353_s30 + $0x8] sm:$0xff] %v2847_v31 }
 0xa98   : > { %3991 = shalt.err (!%p3988_p3)
}
 0xa99   : > { %s3992_s25 = scalar_lea.hbm %s5182_s28, 256  ;;  %s3996_s11 = scalar_lea.hbm %s5235_s10, 512 }
 0xa9a   : > { %p3993_p4 = scmp.ne.s32.totalorder %s5182_s28, %s3992_s25  ;;  %p3997_p9 = scmp.lt.u32.totalorder %s5182_s28, %s5235_s10 }
 0xa9b   : > { %p3998_p10 = scmp.lt.u32.totalorder %s3996_s11, %s3992_s25  ;;  %p4000_p12 = scmp.lt.u32.totalorder %s3992_s25, %s5182_s28 }
 0xa9c   : > { %p3994_p7 = pnand %p3993_p4, %p4142_p5 }
 0xa9d   : > { %p3999_p11 = por %p3998_p10, %p3997_p9 }
 0xa9e   : > { %p3995_p8 = pneg %p3994_p7 }
 0xa9f   : > { %p4001_p13 = por %p4000_p12, %p3999_p11 }
 0xaa1   : > { %p4002_p0 = pnand %p4001_p13, %p3995_p8 }
 0xaa3   : > { %4005 = shalt.err (!%p4002_p0)
}
 0xaa4   : > { %s4047_s17 = smov 128   ;;  %s4048_s21 = smov 8  }
 0xaa5   : > { %3835 = dma.vmem_to_hbm [thread:$0]  (%p4142_p5), %s5177_s27, 256, %s5182_s28, %s5184_s18, %s4047_s17, %s4047_s17, %s4048_s21  }
 0xaa6 PF: > { %p3841_p1 = scmp.ge.s32.totalorder %s4040_s16, 2  ;;  %s2879_s26 = sand.u32 1, %s4028_s13  }
 0xaa7   : > { %s2880_s25 = scalar_lea.sflag [#allocation3], %s2879_s26 }
 0xaa8   : > { %p3838_p2 = pnand %p3841_p1, %p4146_p6 }
 0xaaa   : > { %4023 = dma.done.wait (!%p3838_p2), %s2880_s25, 256  }
 0xaab   : > { %4025 = vsyncadd (!%p3838_p2), %s2880_s25, 4294967040  ;;  %p20_p3 = scmp.ge.s32.totalorder %s4129_s19, 4   ;;  %s5244_s13 = smov %s4032_s14 }
 0xaac   : > { %s5245_s14 = smov %s4036_s15  ;;  %s5246_s15 = smov %s4140_s22 }
 0xaad   : > { %s5247_s16 = smov %s4129_s19  ;;  %22 = sbr.rel (!%p20_p3) target bundleno = 3 (0x3), region = 95 }
 0xab4   :  { %2885 = vsyncpa [#allocation3], 1 }
 0xab5   :  { %2887 = vsyncpa [#allocation3 + $0x1], 1 }

</bundles_post_ra>
